<compile_context>
chip_gen: v7x
topology: tpu7x:2x2x1
jax: 0.10.0
libtpu: 0.0.40
codegen_flags: <defaults>
</compile_context>

<pallas_src>
import jax
import jax.numpy as jnp
from jax.experimental import pallas as pl
from jax.experimental.pallas import tpu as pltpu

EPS = 1e-5
NEG_SLOPE = 0.2

# (kernel, stride, pad) for the four trunk convs -- STATIC config, never traced.
TRUNK_CFG = ((3, 1, 1), (4, 2, 1), (4, 2, 1), (4, 2, 1))
HEAD_CFG = (4, 1, 0)  # conv51 / conv52: 4x4, stride 1, valid
K_ALIGN = 32          # pad im2col contraction dim to a multiple of this


# ----------------------------- Pallas kernels ------------------------------ #

def conv_bn_lrelu_kernel(p_ref, w_ref, g_ref, b_ref, o_ref):
    """o = LeakyReLU_0.2( BN_train( W^T @ patches^T ) * gamma + beta ).

    Channels-first layout:
      p_ref: (K, M)    bf16   (im2col patches, transposed; M = N*Ho*Wo on lanes)
      w_ref: (Cout, K) bf16
      g_ref, b_ref: (Cout, 1) f32
      o_ref: (Cout, M) bf16   (lane-dense store)
    """
    y = jnp.dot(w_ref[...], p_ref[...],
                preferred_element_type=jnp.float32)          # (Cout, M) f32 acc
    m = y.shape[-1]
    inv_m = 1.0 / m                                           # static Python float
    # Single-pass batch-norm statistics over (N, H, W) == the lane axis.
    s1 = jnp.sum(y, axis=-1, keepdims=True)
    s2 = jnp.sum(y * y, axis=-1, keepdims=True)
    mean = s1 * inv_m
    var = jnp.maximum(s2 * inv_m - mean * mean, 0.0)          # guard cancellation
    scale = jax.lax.rsqrt(var + EPS) * g_ref[...]
    z = (y - mean) * scale + b_ref[...]
    o_ref[...] = jnp.where(z >= 0.0, z, NEG_SLOPE * z).astype(o_ref.dtype)


def heads_kernel(p_ref, w_ref, b_ref, o_ref):
    """Fused conv51 + conv52 (4x4 valid, with bias): o (2nz, N) = W^T @ feats + b."""
    o_ref[...] = (
        jnp.dot(w_ref[...], p_ref[...], preferred_element_type=jnp.float32)
        + b_ref[...]
    )


# ------------------------------ call wrappers ------------------------------ #

def _spec(shape):
    n = len(shape)
    return pl.BlockSpec(shape, lambda i, _n=n: (0,) * _n)


_COMPILER_PARAMS = pltpu.CompilerParams(dimension_semantics=("arbitrary",))


def pallas_conv_bn_lrelu(pT, wT, gamma, beta):
    K, M = pT.shape
    Cout = wT.shape[0]
    return pl.pallas_call(
        conv_bn_lrelu_kernel,
        out_shape=jax.ShapeDtypeStruct((Cout, M), jnp.bfloat16),
        grid=(1,),
        in_specs=[_spec((K, M)), _spec((Cout, K)),
                  _spec((Cout, 1)), _spec((Cout, 1))],
        out_specs=_spec((Cout, M)),
        compiler_params=_COMPILER_PARAMS,
    )(pT, wT, gamma, beta)


def pallas_heads(pT, wT, bias):
    K, M = pT.shape
    Cout2 = wT.shape[0]
    return pl.pallas_call(
        heads_kernel,
        out_shape=jax.ShapeDtypeStruct((Cout2, M), jnp.float32),
        grid=(1,),
        in_specs=[_spec((K, M)), _spec((Cout2, K)), _spec((Cout2, 1))],
        out_specs=_spec((Cout2, M)),
        compiler_params=_COMPILER_PARAMS,
    )(pT, wT, bias)


# ------------------------------ plain-JAX glue ------------------------------ #

def im2col_cf(a, k, stride, pad):
    """Channels-first im2col.

    a: (C, N, H, W) -> patches^T of shape (k*k*C, N*Ho*Wo); rows ordered (i, j, c),
    columns ordered (n, yo, xo).  Runs in XLA outside the kernels.
    """
    C, N, H, W = a.shape
    if pad:
        a = jnp.pad(a, ((0, 0), (0, 0), (pad, pad), (pad, pad)))
    Ho = (H + 2 * pad - k) // stride + 1
    Wo = (W + 2 * pad - k) // stride + 1
    slabs = []
    for i in range(k):
        for j in range(k):
            slabs.append(a[:, :,
                           i:i + stride * (Ho - 1) + 1:stride,
                           j:j + stride * (Wo - 1) + 1:stride])
    pT = jnp.concatenate(slabs, axis=0).reshape(k * k * C, N * Ho * Wo)
    return pT, (N, Ho, Wo)


def _to_wT(w, k_align=K_ALIGN):
    """Torch conv weight (Cout, Cin, kh, kw) -> (Cout, Kp) bf16, K ordered (i, j, c),
    zero-padded to a multiple of `k_align`."""
    Cout, Cin, kh, kw = w.shape
    m = jnp.transpose(w, (2, 3, 1, 0)).reshape(kh * kw * Cin, Cout)   # (K, Cout)
    K = m.shape[0]
    Kp = ((K + k_align - 1) // k_align) * k_align
    if Kp != K:
        m = jnp.pad(m, ((0, Kp - K), (0, 0)))
    return jnp.transpose(m).astype(jnp.bfloat16)                      # (Cout, Kp)


def init_params(key, nc, nz, nif):
    """Deterministic synthetic parameters matching _netI's layer shapes (arrays only)."""
    convs = [(nif, nc), (nif * 2, nif), (nif * 4, nif * 2), (nif * 8, nif * 4)]
    keys = jax.random.split(key, 3 * len(convs) + 4)
    ki = 0
    trunk = []
    for (co, ci), (k, _, _) in zip(convs, TRUNK_CFG):
        w = 0.02 * jax.random.normal(keys[ki], (co, ci, k, k), jnp.float32); ki += 1
        gamma = 1.0 + 0.1 * jax.random.normal(keys[ki], (co,), jnp.float32); ki += 1
        beta = 0.1 * jax.random.normal(keys[ki], (co,), jnp.float32); ki += 1
        trunk.append(dict(wT=_to_wT(w),
                          gamma=gamma.reshape(co, 1),
                          beta=beta.reshape(co, 1)))
    # conv51 (mu) then conv52 (log_sigma), fused into one matmul along Cout.
    head_w, head_b = [], []
    for _ in range(2):
        w = 0.02 * jax.random.normal(keys[ki], (nz, nif * 8, 4, 4), jnp.float32); ki += 1
        b = 0.1 * jax.random.normal(keys[ki], (nz,), jnp.float32); ki += 1
        head_w.append(w); head_b.append(b)
    w_cat = jnp.concatenate(head_w, axis=0)   # (2nz, nif*8, 4, 4)
    b_cat = jnp.concatenate(head_b, axis=0)   # (2nz,)
    return dict(main=trunk,
                head_wT=_to_wT(w_cat),
                head_b=b_cat.reshape(-1, 1).astype(jnp.float32))


@jax.jit
def netI_forward(x_nchw, params):
    """x_nchw: (N, nc, H, W) f32 -> (mu, log_sigma), each (N, nz, 1, 1) f32."""
    a = jnp.transpose(x_nchw, (1, 0, 2, 3)).astype(jnp.bfloat16)   # (C, N, H, W)

    # trunk: 4 x [conv -> BN(train) -> LeakyReLU(0.2)], each a single pallas_call
    for (k, s, p), lp in zip(TRUNK_CFG, params["main"]):
        pT, (N, Ho, Wo) = im2col_cf(a, k, s, p)
        Kp = lp["wT"].shape[1]
        if pT.shape[0] != Kp:                         # zero-pad K (layer 1: 27 -> 32)
            pT = jnp.pad(pT, ((0, Kp - pT.shape[0]), (0, 0)))
        yT = pallas_conv_bn_lrelu(pT, lp["wT"], lp["gamma"], lp["beta"])
        a = yT.reshape(-1, N, Ho, Wo)                 # back to (Cout, N, Ho, Wo)

    # fused heads: conv51 + conv52 (one matmul + bias)
    k, s, p = HEAD_CFG
    pT, (N, _, _) = im2col_cf(a, k, s, p)             # (16*nif*8, N)
    out = pallas_heads(pT, params["head_wT"], params["head_b"])   # (2nz, N) f32
    out = jnp.transpose(out)                          # (N, 2nz)
    nz = out.shape[1] // 2
    mu = out[:, :nz].reshape(N, nz, 1, 1)
    log_sigma = out[:, nz:].reshape(N, nz, 1, 1)
    return mu, log_sigma


# ---------------------------------- main ----------------------------------- #

if __name__ == "__main__":
    # Input must be 32x32 so the trunk produces a 4x4 map for the 4x4 valid heads.
    nc, nz, nif = 3, 8, 4
    batch = 2

    key = jax.random.PRNGKey(0)
    key_x, key_p = jax.random.split(key)
    x = jax.random.normal(key_x, (batch, nc, 32, 32), jnp.float32)
    params = init_params(key_p, nc, nz, nif)

    mu, log_sigma = netI_forward(x, params)
    jax.block_until_ready((mu, log_sigma))

    assert mu.shape == (batch, nz, 1, 1) and log_sigma.shape == (batch, nz, 1, 1)
    assert bool(jnp.all(jnp.isfinite(mu))) and bool(jnp.all(jnp.isfinite(log_sigma)))
    print("KERNEL_OK")
</pallas_src>

<mosaic_0001>
module attributes {stable_mosaic.version = 11 : i64} {
  func.func @conv_bn_lrelu_kernel(%arg0: i32, %arg1: memref<32x2048xbf16, #tpu.memory_space<vmem>>, %arg2: memref<4x32xbf16, #tpu.memory_space<vmem>>, %arg3: memref<4x1xf32, #tpu.memory_space<vmem>>, %arg4: memref<4x1xf32, #tpu.memory_space<vmem>>, %arg5: memref<4x2048xbf16, #tpu.memory_space<vmem>>) attributes {dimension_semantics = [#tpu.dimension_semantics<arbitrary>], iteration_bounds = array<i64: 1>, scalar_prefetch = 0 : i64, scratch_operands = 0 : i64, tpu.core_type = #tpu.core_type<tc>, window_params = [{pipeline_mode = #tpu.pipeline_mode<synchronous>, transform_indices = @transform_0, window_bounds = array<i64: 32, 2048>}, {pipeline_mode = #tpu.pipeline_mode<synchronous>, transform_indices = @transform_1, window_bounds = array<i64: 4, 32>}, {pipeline_mode = #tpu.pipeline_mode<synchronous>, transform_indices = @transform_2, window_bounds = array<i64: 4, 1>}, {pipeline_mode = #tpu.pipeline_mode<synchronous>, transform_indices = @transform_3, window_bounds = array<i64: 4, 1>}, {pipeline_mode = #tpu.pipeline_mode<synchronous>, transform_indices = @transform_4, window_bounds = array<i64: 4, 2048>}]} {
    %c0 = arith.constant 0 : index
    %c0_0 = arith.constant 0 : index
    %0 = vector.load %arg2[%c0, %c0_0] : memref<4x32xbf16, #tpu.memory_space<vmem>>, vector<4x32xbf16>
    %c0_1 = arith.constant 0 : index
    %c0_2 = arith.constant 0 : index
    %1 = vector.load %arg1[%c0_1, %c0_2] : memref<32x2048xbf16, #tpu.memory_space<vmem>>, vector<32x2048xbf16>
    %cst = arith.constant dense<0.000000e+00> : vector<4x2048xf32>
    %2 = tpu.matmul %0, %1, %cst {dimension_numbers = #tpu.dot_dimension_numbers<[1], [0], [0], [1], [0, 0, 1, 1], [], []>} : vector<4x32xbf16>, vector<32x2048xbf16>, vector<4x2048xf32> -> vector<4x2048xf32>
    %cst_3 = arith.constant dense<0.000000e+00> : vector<4xf32>
    %3 = vector.multi_reduction <add>, %2, %cst_3 [1] : vector<4x2048xf32> to vector<4xf32>
    %4 = vector.shape_cast %3 : vector<4xf32> to vector<4x1xf32>
    %5 = arith.mulf %2, %2 : vector<4x2048xf32>
    %cst_4 = arith.constant dense<0.000000e+00> : vector<4xf32>
    %6 = vector.multi_reduction <add>, %5, %cst_4 [1] : vector<4x2048xf32> to vector<4xf32>
    %7 = vector.shape_cast %6 : vector<4xf32> to vector<4x1xf32>
    %cst_5 = arith.constant 4.8828125E-4 : f32
    %8 = vector.broadcast %cst_5 : f32 to vector<4x1xf32>
    %9 = arith.mulf %4, %8 : vector<4x1xf32>
    %cst_6 = arith.constant 4.8828125E-4 : f32
    %10 = vector.broadcast %cst_6 : f32 to vector<4x1xf32>
    %11 = arith.mulf %7, %10 : vector<4x1xf32>
    %12 = arith.mulf %9, %9 : vector<4x1xf32>
    %13 = arith.subf %11, %12 : vector<4x1xf32>
    %cst_7 = arith.constant 0.000000e+00 : f32
    %14 = vector.broadcast %cst_7 : f32 to vector<4x1xf32>
    %15 = arith.maximumf %13, %14 : vector<4x1xf32>
    %cst_8 = arith.constant 9.99999974E-6 : f32
    %16 = vector.broadcast %cst_8 : f32 to vector<4x1xf32>
    %17 = arith.addf %15, %16 : vector<4x1xf32>
    %18 = math.rsqrt %17 : vector<4x1xf32>
    %c0_9 = arith.constant 0 : index
    %c0_10 = arith.constant 0 : index
    %19 = vector.load %arg3[%c0_9, %c0_10] : memref<4x1xf32, #tpu.memory_space<vmem>>, vector<4x1xf32>
    %20 = arith.mulf %18, %19 : vector<4x1xf32>
    %21 = vector.broadcast %9 : vector<4x1xf32> to vector<4x2048xf32>
    %22 = arith.subf %2, %21 : vector<4x2048xf32>
    %23 = vector.broadcast %20 : vector<4x1xf32> to vector<4x2048xf32>
    %24 = arith.mulf %22, %23 : vector<4x2048xf32>
    %c0_11 = arith.constant 0 : index
    %c0_12 = arith.constant 0 : index
    %25 = vector.load %arg4[%c0_11, %c0_12] : memref<4x1xf32, #tpu.memory_space<vmem>>, vector<4x1xf32>
    %26 = vector.broadcast %25 : vector<4x1xf32> to vector<4x2048xf32>
    %27 = arith.addf %24, %26 : vector<4x2048xf32>
    %cst_13 = arith.constant 0.000000e+00 : f32
    %28 = vector.broadcast %cst_13 : f32 to vector<4x2048xf32>
    %29 = arith.cmpf oge, %27, %28 : vector<4x2048xf32>
    %cst_14 = arith.constant 2.000000e-01 : f32
    %30 = vector.broadcast %cst_14 : f32 to vector<4x2048xf32>
    %31 = arith.mulf %30, %27 : vector<4x2048xf32>
    %32 = arith.select %29, %27, %31 : vector<4x2048xi1>, vector<4x2048xf32>
    %33 = arith.truncf %32 : vector<4x2048xf32> to vector<4x2048xbf16>
    %c0_15 = arith.constant 0 : index
    %c0_16 = arith.constant 0 : index
    %34 = vector.load %arg5[%c0_15, %c0_16] : memref<4x2048xbf16, #tpu.memory_space<vmem>>, vector<4x2048xbf16>
    tpu.vector_store %arg5[%c0_15, %c0_16], %33 {strides = array<i32>} : memref<4x2048xbf16, #tpu.memory_space<vmem>>, vector<4x2048xbf16>,
    return
  }
  func.func @transform_0(%arg0: i32) -> (i32, i32) {
    %c0_i32 = arith.constant 0 : i32
    %c0_i32_0 = arith.constant 0 : i32
    %c0_i32_1 = arith.constant 0 : i32
    return %c0_i32, %c0_i32_0 : i32, i32
  }
  func.func @transform_1(%arg0: i32) -> (i32, i32) {
    %c0_i32 = arith.constant 0 : i32
    %c0_i32_0 = arith.constant 0 : i32
    %c0_i32_1 = arith.constant 0 : i32
    return %c0_i32, %c0_i32_0 : i32, i32
  }
  func.func @transform_2(%arg0: i32) -> (i32, i32) {
    %c0_i32 = arith.constant 0 : i32
    %c0_i32_0 = arith.constant 0 : i32
    %c0_i32_1 = arith.constant 0 : i32
    return %c0_i32, %c0_i32_0 : i32, i32
  }
  func.func @transform_3(%arg0: i32) -> (i32, i32) {
    %c0_i32 = arith.constant 0 : i32
    %c0_i32_0 = arith.constant 0 : i32
    %c0_i32_1 = arith.constant 0 : i32
    return %c0_i32, %c0_i32_0 : i32, i32
  }
  func.func @transform_4(%arg0: i32) -> (i32, i32) {
    %c0_i32 = arith.constant 0 : i32
    %c0_i32_0 = arith.constant 0 : i32
    %c0_i32_1 = arith.constant 0 : i32
    return %c0_i32, %c0_i32_0 : i32, i32
  }
}

module attributes {stable_mosaic.version = 11 : i64} {
  func.func @conv_bn_lrelu_kernel(%arg0: i32, %arg1: memref<64x512xbf16, #tpu.memory_space<vmem>>, %arg2: memref<8x64xbf16, #tpu.memory_space<vmem>>, %arg3: memref<8x1xf32, #tpu.memory_space<vmem>>, %arg4: memref<8x1xf32, #tpu.memory_space<vmem>>, %arg5: memref<8x512xbf16, #tpu.memory_space<vmem>>) attributes {dimension_semantics = [#tpu.dimension_semantics<arbitrary>], iteration_bounds = array<i64: 1>, scalar_prefetch = 0 : i64, scratch_operands = 0 : i64, tpu.core_type = #tpu.core_type<tc>, window_params = [{pipeline_mode = #tpu.pipeline_mode<synchronous>, transform_indices = @transform_0, window_bounds = array<i64: 64, 512>}, {pipeline_mode = #tpu.pipeline_mode<synchronous>, transform_indices = @transform_1, window_bounds = array<i64: 8, 64>}, {pipeline_mode = #tpu.pipeline_mode<synchronous>, transform_indices = @transform_2, window_bounds = array<i64: 8, 1>}, {pipeline_mode = #tpu.pipeline_mode<synchronous>, transform_indices = @transform_3, window_bounds = array<i64: 8, 1>}, {pipeline_mode = #tpu.pipeline_mode<synchronous>, transform_indices = @transform_4, window_bounds = array<i64: 8, 512>}]} {
    %c0 = arith.constant 0 : index
    %c0_0 = arith.constant 0 : index
    %0 = vector.load %arg2[%c0, %c0_0] : memref<8x64xbf16, #tpu.memory_space<vmem>>, vector<8x64xbf16>
    %c0_1 = arith.constant 0 : index
    %c0_2 = arith.constant 0 : index
    %1 = vector.load %arg1[%c0_1, %c0_2] : memref<64x512xbf16, #tpu.memory_space<vmem>>, vector<64x512xbf16>
    %cst = arith.constant dense<0.000000e+00> : vector<8x512xf32>
    %2 = tpu.matmul %0, %1, %cst {dimension_numbers = #tpu.dot_dimension_numbers<[1], [0], [0], [1], [0, 0, 1, 1], [], []>} : vector<8x64xbf16>, vector<64x512xbf16>, vector<8x512xf32> -> vector<8x512xf32>
    %cst_3 = arith.constant dense<0.000000e+00> : vector<8xf32>
    %3 = vector.multi_reduction <add>, %2, %cst_3 [1] : vector<8x512xf32> to vector<8xf32>
    %4 = vector.shape_cast %3 : vector<8xf32> to vector<8x1xf32>
    %5 = arith.mulf %2, %2 : vector<8x512xf32>
    %cst_4 = arith.constant dense<0.000000e+00> : vector<8xf32>
    %6 = vector.multi_reduction <add>, %5, %cst_4 [1] : vector<8x512xf32> to vector<8xf32>
    %7 = vector.shape_cast %6 : vector<8xf32> to vector<8x1xf32>
    %cst_5 = arith.constant 0.001953125 : f32
    %8 = vector.broadcast %cst_5 : f32 to vector<8x1xf32>
    %9 = arith.mulf %4, %8 : vector<8x1xf32>
    %cst_6 = arith.constant 0.001953125 : f32
    %10 = vector.broadcast %cst_6 : f32 to vector<8x1xf32>
    %11 = arith.mulf %7, %10 : vector<8x1xf32>
    %12 = arith.mulf %9, %9 : vector<8x1xf32>
    %13 = arith.subf %11, %12 : vector<8x1xf32>
    %cst_7 = arith.constant 0.000000e+00 : f32
    %14 = vector.broadcast %cst_7 : f32 to vector<8x1xf32>
    %15 = arith.maximumf %13, %14 : vector<8x1xf32>
    %cst_8 = arith.constant 9.99999974E-6 : f32
    %16 = vector.broadcast %cst_8 : f32 to vector<8x1xf32>
    %17 = arith.addf %15, %16 : vector<8x1xf32>
    %18 = math.rsqrt %17 : vector<8x1xf32>
    %c0_9 = arith.constant 0 : index
    %c0_10 = arith.constant 0 : index
    %19 = vector.load %arg3[%c0_9, %c0_10] : memref<8x1xf32, #tpu.memory_space<vmem>>, vector<8x1xf32>
    %20 = arith.mulf %18, %19 : vector<8x1xf32>
    %21 = vector.broadcast %9 : vector<8x1xf32> to vector<8x512xf32>
    %22 = arith.subf %2, %21 : vector<8x512xf32>
    %23 = vector.broadcast %20 : vector<8x1xf32> to vector<8x512xf32>
    %24 = arith.mulf %22, %23 : vector<8x512xf32>
    %c0_11 = arith.constant 0 : index
    %c0_12 = arith.constant 0 : index
    %25 = vector.load %arg4[%c0_11, %c0_12] : memref<8x1xf32, #tpu.memory_space<vmem>>, vector<8x1xf32>
    %26 = vector.broadcast %25 : vector<8x1xf32> to vector<8x512xf32>
    %27 = arith.addf %24, %26 : vector<8x512xf32>
    %cst_13 = arith.constant 0.000000e+00 : f32
    %28 = vector.broadcast %cst_13 : f32 to vector<8x512xf32>
    %29 = arith.cmpf oge, %27, %28 : vector<8x512xf32>
    %cst_14 = arith.constant 2.000000e-01 : f32
    %30 = vector.broadcast %cst_14 : f32 to vector<8x512xf32>
    %31 = arith.mulf %30, %27 : vector<8x512xf32>
    %32 = arith.select %29, %27, %31 : vector<8x512xi1>, vector<8x512xf32>
    %33 = arith.truncf %32 : vector<8x512xf32> to vector<8x512xbf16>
    %c0_15 = arith.constant 0 : index
    %c0_16 = arith.constant 0 : index
    %34 = vector.load %arg5[%c0_15, %c0_16] : memref<8x512xbf16, #tpu.memory_space<vmem>>, vector<8x512xbf16>
    tpu.vector_store %arg5[%c0_15, %c0_16], %33 {strides = array<i32>} : memref<8x512xbf16, #tpu.memory_space<vmem>>, vector<8x512xbf16>,
    return
  }
  func.func @transform_0(%arg0: i32) -> (i32, i32) {
    %c0_i32 = arith.constant 0 : i32
    %c0_i32_0 = arith.constant 0 : i32
    %c0_i32_1 = arith.constant 0 : i32
    return %c0_i32, %c0_i32_0 : i32, i32
  }
  func.func @transform_1(%arg0: i32) -> (i32, i32) {
    %c0_i32 = arith.constant 0 : i32
    %c0_i32_0 = arith.constant 0 : i32
    %c0_i32_1 = arith.constant 0 : i32
    return %c0_i32, %c0_i32_0 : i32, i32
  }
  func.func @transform_2(%arg0: i32) -> (i32, i32) {
    %c0_i32 = arith.constant 0 : i32
    %c0_i32_0 = arith.constant 0 : i32
    %c0_i32_1 = arith.constant 0 : i32
    return %c0_i32, %c0_i32_0 : i32, i32
  }
  func.func @transform_3(%arg0: i32) -> (i32, i32) {
    %c0_i32 = arith.constant 0 : i32
    %c0_i32_0 = arith.constant 0 : i32
    %c0_i32_1 = arith.constant 0 : i32
    return %c0_i32, %c0_i32_0 : i32, i32
  }
  func.func @transform_4(%arg0: i32) -> (i32, i32) {
    %c0_i32 = arith.constant 0 : i32
    %c0_i32_0 = arith.constant 0 : i32
    %c0_i32_1 = arith.constant 0 : i32
    return %c0_i32, %c0_i32_0 : i32, i32
  }
}

module attributes {stable_mosaic.version = 11 : i64} {
  func.func @conv_bn_lrelu_kernel(%arg0: i32, %arg1: memref<128x128xbf16, #tpu.memory_space<vmem>>, %arg2: memref<16x128xbf16, #tpu.memory_space<vmem>>, %arg3: memref<16x1xf32, #tpu.memory_space<vmem>>, %arg4: memref<16x1xf32, #tpu.memory_space<vmem>>, %arg5: memref<16x128xbf16, #tpu.memory_space<vmem>>) attributes {dimension_semantics = [#tpu.dimension_semantics<arbitrary>], iteration_bounds = array<i64: 1>, scalar_prefetch = 0 : i64, scratch_operands = 0 : i64, tpu.core_type = #tpu.core_type<tc>, window_params = [{pipeline_mode = #tpu.pipeline_mode<synchronous>, transform_indices = @transform_0, window_bounds = array<i64: 128, 128>}, {pipeline_mode = #tpu.pipeline_mode<synchronous>, transform_indices = @transform_1, window_bounds = array<i64: 16, 128>}, {pipeline_mode = #tpu.pipeline_mode<synchronous>, transform_indices = @transform_2, window_bounds = array<i64: 16, 1>}, {pipeline_mode = #tpu.pipeline_mode<synchronous>, transform_indices = @transform_3, window_bounds = array<i64: 16, 1>}, {pipeline_mode = #tpu.pipeline_mode<synchronous>, transform_indices = @transform_4, window_bounds = array<i64: 16, 128>}]} {
    %c0 = arith.constant 0 : index
    %c0_0 = arith.constant 0 : index
    %0 = vector.load %arg2[%c0, %c0_0] : memref<16x128xbf16, #tpu.memory_space<vmem>>, vector<16x128xbf16>
    %c0_1 = arith.constant 0 : index
    %c0_2 = arith.constant 0 : index
    %1 = vector.load %arg1[%c0_1, %c0_2] : memref<128x128xbf16, #tpu.memory_space<vmem>>, vector<128x128xbf16>
    %cst = arith.constant dense<0.000000e+00> : vector<16x128xf32>
    %2 = tpu.matmul %0, %1, %cst {dimension_numbers = #tpu.dot_dimension_numbers<[1], [0], [0], [1], [0, 0, 1, 1], [], []>} : vector<16x128xbf16>, vector<128x128xbf16>, vector<16x128xf32> -> vector<16x128xf32>
    %cst_3 = arith.constant dense<0.000000e+00> : vector<16xf32>
    %3 = vector.multi_reduction <add>, %2, %cst_3 [1] : vector<16x128xf32> to vector<16xf32>
    %4 = vector.shape_cast %3 : vector<16xf32> to vector<16x1xf32>
    %5 = arith.mulf %2, %2 : vector<16x128xf32>
    %cst_4 = arith.constant dense<0.000000e+00> : vector<16xf32>
    %6 = vector.multi_reduction <add>, %5, %cst_4 [1] : vector<16x128xf32> to vector<16xf32>
    %7 = vector.shape_cast %6 : vector<16xf32> to vector<16x1xf32>
    %cst_5 = arith.constant 7.812500e-03 : f32
    %8 = vector.broadcast %cst_5 : f32 to vector<16x1xf32>
    %9 = arith.mulf %4, %8 : vector<16x1xf32>
    %cst_6 = arith.constant 7.812500e-03 : f32
    %10 = vector.broadcast %cst_6 : f32 to vector<16x1xf32>
    %11 = arith.mulf %7, %10 : vector<16x1xf32>
    %12 = arith.mulf %9, %9 : vector<16x1xf32>
    %13 = arith.subf %11, %12 : vector<16x1xf32>
    %cst_7 = arith.constant 0.000000e+00 : f32
    %14 = vector.broadcast %cst_7 : f32 to vector<16x1xf32>
    %15 = arith.maximumf %13, %14 : vector<16x1xf32>
    %cst_8 = arith.constant 9.99999974E-6 : f32
    %16 = vector.broadcast %cst_8 : f32 to vector<16x1xf32>
    %17 = arith.addf %15, %16 : vector<16x1xf32>
    %18 = math.rsqrt %17 : vector<16x1xf32>
    %c0_9 = arith.constant 0 : index
    %c0_10 = arith.constant 0 : index
    %19 = vector.load %arg3[%c0_9, %c0_10] : memref<16x1xf32, #tpu.memory_space<vmem>>, vector<16x1xf32>
    %20 = arith.mulf %18, %19 : vector<16x1xf32>
    %21 = vector.broadcast %9 : vector<16x1xf32> to vector<16x128xf32>
    %22 = arith.subf %2, %21 : vector<16x128xf32>
    %23 = vector.broadcast %20 : vector<16x1xf32> to vector<16x128xf32>
    %24 = arith.mulf %22, %23 : vector<16x128xf32>
    %c0_11 = arith.constant 0 : index
    %c0_12 = arith.constant 0 : index
    %25 = vector.load %arg4[%c0_11, %c0_12] : memref<16x1xf32, #tpu.memory_space<vmem>>, vector<16x1xf32>
    %26 = vector.broadcast %25 : vector<16x1xf32> to vector<16x128xf32>
    %27 = arith.addf %24, %26 : vector<16x128xf32>
    %cst_13 = arith.constant 0.000000e+00 : f32
    %28 = vector.broadcast %cst_13 : f32 to vector<16x128xf32>
    %29 = arith.cmpf oge, %27, %28 : vector<16x128xf32>
    %cst_14 = arith.constant 2.000000e-01 : f32
    %30 = vector.broadcast %cst_14 : f32 to vector<16x128xf32>
    %31 = arith.mulf %30, %27 : vector<16x128xf32>
    %32 = arith.select %29, %27, %31 : vector<16x128xi1>, vector<16x128xf32>
    %33 = arith.truncf %32 : vector<16x128xf32> to vector<16x128xbf16>
    %c0_15 = arith.constant 0 : index
    %c0_16 = arith.constant 0 : index
    %34 = vector.load %arg5[%c0_15, %c0_16] : memref<16x128xbf16, #tpu.memory_space<vmem>>, vector<16x128xbf16>
    tpu.vector_store %arg5[%c0_15, %c0_16], %33 {strides = array<i32>} : memref<16x128xbf16, #tpu.memory_space<vmem>>, vector<16x128xbf16>,
    return
  }
  func.func @transform_0(%arg0: i32) -> (i32, i32) {
    %c0_i32 = arith.constant 0 : i32
    %c0_i32_0 = arith.constant 0 : i32
    %c0_i32_1 = arith.constant 0 : i32
    return %c0_i32, %c0_i32_0 : i32, i32
  }
  func.func @transform_1(%arg0: i32) -> (i32, i32) {
    %c0_i32 = arith.constant 0 : i32
    %c0_i32_0 = arith.constant 0 : i32
    %c0_i32_1 = arith.constant 0 : i32
    return %c0_i32, %c0_i32_0 : i32, i32
  }
  func.func @transform_2(%arg0: i32) -> (i32, i32) {
    %c0_i32 = arith.constant 0 : i32
    %c0_i32_0 = arith.constant 0 : i32
    %c0_i32_1 = arith.constant 0 : i32
    return %c0_i32, %c0_i32_0 : i32, i32
  }
  func.func @transform_3(%arg0: i32) -> (i32, i32) {
    %c0_i32 = arith.constant 0 : i32
    %c0_i32_0 = arith.constant 0 : i32
    %c0_i32_1 = arith.constant 0 : i32
    return %c0_i32, %c0_i32_0 : i32, i32
  }
  func.func @transform_4(%arg0: i32) -> (i32, i32) {
    %c0_i32 = arith.constant 0 : i32
    %c0_i32_0 = arith.constant 0 : i32
    %c0_i32_1 = arith.constant 0 : i32
    return %c0_i32, %c0_i32_0 : i32, i32
  }
}

module attributes {stable_mosaic.version = 11 : i64} {
  func.func @conv_bn_lrelu_kernel(%arg0: i32, %arg1: memref<256x32xbf16, #tpu.memory_space<vmem>>, %arg2: memref<32x256xbf16, #tpu.memory_space<vmem>>, %arg3: memref<32x1xf32, #tpu.memory_space<vmem>>, %arg4: memref<32x1xf32, #tpu.memory_space<vmem>>, %arg5: memref<32x32xbf16, #tpu.memory_space<vmem>>) attributes {dimension_semantics = [#tpu.dimension_semantics<arbitrary>], iteration_bounds = array<i64: 1>, scalar_prefetch = 0 : i64, scratch_operands = 0 : i64, tpu.core_type = #tpu.core_type<tc>, window_params = [{pipeline_mode = #tpu.pipeline_mode<synchronous>, transform_indices = @transform_0, window_bounds = array<i64: 256, 32>}, {pipeline_mode = #tpu.pipeline_mode<synchronous>, transform_indices = @transform_1, window_bounds = array<i64: 32, 256>}, {pipeline_mode = #tpu.pipeline_mode<synchronous>, transform_indices = @transform_2, window_bounds = array<i64: 32, 1>}, {pipeline_mode = #tpu.pipeline_mode<synchronous>, transform_indices = @transform_3, window_bounds = array<i64: 32, 1>}, {pipeline_mode = #tpu.pipeline_mode<synchronous>, transform_indices = @transform_4, window_bounds = array<i64: 32, 32>}]} {
    %c0 = arith.constant 0 : index
    %c0_0 = arith.constant 0 : index
    %0 = vector.load %arg2[%c0, %c0_0] : memref<32x256xbf16, #tpu.memory_space<vmem>>, vector<32x256xbf16>
    %c0_1 = arith.constant 0 : index
    %c0_2 = arith.constant 0 : index
    %1 = vector.load %arg1[%c0_1, %c0_2] : memref<256x32xbf16, #tpu.memory_space<vmem>>, vector<256x32xbf16>
    %cst = arith.constant dense<0.000000e+00> : vector<32x32xf32>
    %2 = tpu.matmul %0, %1, %cst {dimension_numbers = #tpu.dot_dimension_numbers<[1], [0], [0], [1], [0, 0, 1, 1], [], []>} : vector<32x256xbf16>, vector<256x32xbf16>, vector<32x32xf32> -> vector<32x32xf32>
    %cst_3 = arith.constant dense<0.000000e+00> : vector<32xf32>
    %3 = vector.multi_reduction <add>, %2, %cst_3 [1] : vector<32x32xf32> to vector<32xf32>
    %4 = vector.shape_cast %3 : vector<32xf32> to vector<32x1xf32>
    %5 = arith.mulf %2, %2 : vector<32x32xf32>
    %cst_4 = arith.constant dense<0.000000e+00> : vector<32xf32>
    %6 = vector.multi_reduction <add>, %5, %cst_4 [1] : vector<32x32xf32> to vector<32xf32>
    %7 = vector.shape_cast %6 : vector<32xf32> to vector<32x1xf32>
    %cst_5 = arith.constant 3.125000e-02 : f32
    %8 = vector.broadcast %cst_5 : f32 to vector<32x1xf32>
    %9 = arith.mulf %4, %8 : vector<32x1xf32>
    %cst_6 = arith.constant 3.125000e-02 : f32
    %10 = vector.broadcast %cst_6 : f32 to vector<32x1xf32>
    %11 = arith.mulf %7, %10 : vector<32x1xf32>
    %12 = arith.mulf %9, %9 : vector<32x1xf32>
    %13 = arith.subf %11, %12 : vector<32x1xf32>
    %cst_7 = arith.constant 0.000000e+00 : f32
    %14 = vector.broadcast %cst_7 : f32 to vector<32x1xf32>
    %15 = arith.maximumf %13, %14 : vector<32x1xf32>
    %cst_8 = arith.constant 9.99999974E-6 : f32
    %16 = vector.broadcast %cst_8 : f32 to vector<32x1xf32>
    %17 = arith.addf %15, %16 : vector<32x1xf32>
    %18 = math.rsqrt %17 : vector<32x1xf32>
    %c0_9 = arith.constant 0 : index
    %c0_10 = arith.constant 0 : index
    %19 = vector.load %arg3[%c0_9, %c0_10] : memref<32x1xf32, #tpu.memory_space<vmem>>, vector<32x1xf32>
    %20 = arith.mulf %18, %19 : vector<32x1xf32>
    %21 = vector.broadcast %9 : vector<32x1xf32> to vector<32x32xf32>
    %22 = arith.subf %2, %21 : vector<32x32xf32>
    %23 = vector.broadcast %20 : vector<32x1xf32> to vector<32x32xf32>
    %24 = arith.mulf %22, %23 : vector<32x32xf32>
    %c0_11 = arith.constant 0 : index
    %c0_12 = arith.constant 0 : index
    %25 = vector.load %arg4[%c0_11, %c0_12] : memref<32x1xf32, #tpu.memory_space<vmem>>, vector<32x1xf32>
    %26 = vector.broadcast %25 : vector<32x1xf32> to vector<32x32xf32>
    %27 = arith.addf %24, %26 : vector<32x32xf32>
    %cst_13 = arith.constant 0.000000e+00 : f32
    %28 = vector.broadcast %cst_13 : f32 to vector<32x32xf32>
    %29 = arith.cmpf oge, %27, %28 : vector<32x32xf32>
    %cst_14 = arith.constant 2.000000e-01 : f32
    %30 = vector.broadcast %cst_14 : f32 to vector<32x32xf32>
    %31 = arith.mulf %30, %27 : vector<32x32xf32>
    %32 = arith.select %29, %27, %31 : vector<32x32xi1>, vector<32x32xf32>
    %33 = arith.truncf %32 : vector<32x32xf32> to vector<32x32xbf16>
    %c0_15 = arith.constant 0 : index
    %c0_16 = arith.constant 0 : index
    %34 = vector.load %arg5[%c0_15, %c0_16] : memref<32x32xbf16, #tpu.memory_space<vmem>>, vector<32x32xbf16>
    tpu.vector_store %arg5[%c0_15, %c0_16], %33 {strides = array<i32>} : memref<32x32xbf16, #tpu.memory_space<vmem>>, vector<32x32xbf16>,
    return
  }
  func.func @transform_0(%arg0: i32) -> (i32, i32) {
    %c0_i32 = arith.constant 0 : i32
    %c0_i32_0 = arith.constant 0 : i32
    %c0_i32_1 = arith.constant 0 : i32
    return %c0_i32, %c0_i32_0 : i32, i32
  }
  func.func @transform_1(%arg0: i32) -> (i32, i32) {
    %c0_i32 = arith.constant 0 : i32
    %c0_i32_0 = arith.constant 0 : i32
    %c0_i32_1 = arith.constant 0 : i32
    return %c0_i32, %c0_i32_0 : i32, i32
  }
  func.func @transform_2(%arg0: i32) -> (i32, i32) {
    %c0_i32 = arith.constant 0 : i32
    %c0_i32_0 = arith.constant 0 : i32
    %c0_i32_1 = arith.constant 0 : i32
    return %c0_i32, %c0_i32_0 : i32, i32
  }
  func.func @transform_3(%arg0: i32) -> (i32, i32) {
    %c0_i32 = arith.constant 0 : i32
    %c0_i32_0 = arith.constant 0 : i32
    %c0_i32_1 = arith.constant 0 : i32
    return %c0_i32, %c0_i32_0 : i32, i32
  }
  func.func @transform_4(%arg0: i32) -> (i32, i32) {
    %c0_i32 = arith.constant 0 : i32
    %c0_i32_0 = arith.constant 0 : i32
    %c0_i32_1 = arith.constant 0 : i32
    return %c0_i32, %c0_i32_0 : i32, i32
  }
}

module attributes {stable_mosaic.version = 11 : i64} {
  func.func @heads_kernel(%arg0: i32, %arg1: memref<512x2xbf16, #tpu.memory_space<vmem>>, %arg2: memref<16x512xbf16, #tpu.memory_space<vmem>>, %arg3: memref<16x1xf32, #tpu.memory_space<vmem>>, %arg4: memref<16x2xf32, #tpu.memory_space<vmem>>) attributes {dimension_semantics = [#tpu.dimension_semantics<arbitrary>], iteration_bounds = array<i64: 1>, scalar_prefetch = 0 : i64, scratch_operands = 0 : i64, tpu.core_type = #tpu.core_type<tc>, window_params = [{pipeline_mode = #tpu.pipeline_mode<synchronous>, transform_indices = @transform_0, window_bounds = array<i64: 512, 2>}, {pipeline_mode = #tpu.pipeline_mode<synchronous>, transform_indices = @transform_1, window_bounds = array<i64: 16, 512>}, {pipeline_mode = #tpu.pipeline_mode<synchronous>, transform_indices = @transform_2, window_bounds = array<i64: 16, 1>}, {pipeline_mode = #tpu.pipeline_mode<synchronous>, transform_indices = @transform_3, window_bounds = array<i64: 16, 2>}]} {
    %c0 = arith.constant 0 : index
    %c0_0 = arith.constant 0 : index
    %0 = vector.load %arg2[%c0, %c0_0] : memref<16x512xbf16, #tpu.memory_space<vmem>>, vector<16x512xbf16>
    %c0_1 = arith.constant 0 : index
    %c0_2 = arith.constant 0 : index
    %1 = vector.load %arg1[%c0_1, %c0_2] : memref<512x2xbf16, #tpu.memory_space<vmem>>, vector<512x2xbf16>
    %cst = arith.constant dense<0.000000e+00> : vector<16x2xf32>
    %2 = tpu.matmul %0, %1, %cst {dimension_numbers = #tpu.dot_dimension_numbers<[1], [0], [0], [1], [0, 0, 1, 1], [], []>} : vector<16x512xbf16>, vector<512x2xbf16>, vector<16x2xf32> -> vector<16x2xf32>
    %c0_3 = arith.constant 0 : index
    %c0_4 = arith.constant 0 : index
    %3 = vector.load %arg3[%c0_3, %c0_4] : memref<16x1xf32, #tpu.memory_space<vmem>>, vector<16x1xf32>
    %4 = vector.broadcast %3 : vector<16x1xf32> to vector<16x2xf32>
    %5 = arith.addf %2, %4 : vector<16x2xf32>
    %c0_5 = arith.constant 0 : index
    %c0_6 = arith.constant 0 : index
    %6 = vector.load %arg4[%c0_5, %c0_6] : memref<16x2xf32, #tpu.memory_space<vmem>>, vector<16x2xf32>
    tpu.vector_store %arg4[%c0_5, %c0_6], %5 {strides = array<i32>} : memref<16x2xf32, #tpu.memory_space<vmem>>, vector<16x2xf32>,
    return
  }
  func.func @transform_0(%arg0: i32) -> (i32, i32) {
    %c0_i32 = arith.constant 0 : i32
    %c0_i32_0 = arith.constant 0 : i32
    %c0_i32_1 = arith.constant 0 : i32
    return %c0_i32, %c0_i32_0 : i32, i32
  }
  func.func @transform_1(%arg0: i32) -> (i32, i32) {
    %c0_i32 = arith.constant 0 : i32
    %c0_i32_0 = arith.constant 0 : i32
    %c0_i32_1 = arith.constant 0 : i32
    return %c0_i32, %c0_i32_0 : i32, i32
  }
  func.func @transform_2(%arg0: i32) -> (i32, i32) {
    %c0_i32 = arith.constant 0 : i32
    %c0_i32_0 = arith.constant 0 : i32
    %c0_i32_1 = arith.constant 0 : i32
    return %c0_i32, %c0_i32_0 : i32, i32
  }
  func.func @transform_3(%arg0: i32) -> (i32, i32) {
    %c0_i32 = arith.constant 0 : i32
    %c0_i32_0 = arith.constant 0 : i32
    %c0_i32_1 = arith.constant 0 : i32
    return %c0_i32, %c0_i32_0 : i32, i32
  }
}

</mosaic_0001>

<bundles_post_ra>
// kernel: netI_forward.5
= control target key start
LH: loop header
LB: loop body
LE: loop exit
PB: predicated region body
PF: predicated region fallthrough
CT: control target
= control target key end

     0   :  { %v908_v3 = vmov 0   ;;  %vm211_vm0 = vcmask 261120   ;;  %vm543_vm1 = vcmask 1043456   ;;  %s1224_s0 = inlined_call_operand.vmem [shape: bf16[32,2048], index: 0, kind: input, shape index: {}]   ;;  %s1225_s1 = inlined_call_operand.vmem [shape: bf16[4,32], index: 1, kind: input, shape index: {}]   ;;  %s1226_s2 = inlined_call_operand.vmem [shape: f32[4,1], index: 2, kind: input, shape index: {}]   ;;  %s1227_s3 = inlined_call_operand.vmem [shape: f32[4,1], index: 3, kind: input, shape index: {}]   ;;  %s1228_s4 = inlined_call_operand.vmem [shape: bf16[4,2048], index: 4, kind: output, shape index: {}]  }
   0x1   :  { %v19_v0 = vld [vmem:[%s1224_s0] sm:$0xff]  ;;  %v20_v2 = vld [vmem:[%s1224_s0 + $0x8] sm:$0xff]  ;;  %247 = vmatprep.mubr.bf16.mxu0 %v908_v3  ;;  %288 = vmatprep.mubr.bf16.mxu1 %v908_v3  ;;  %v21_v15 = vld [vmem:[%s1224_s0 + $0x10] sm:$0xff] }
   0x2   :  { %v27_v1 = vld [vmem:[%s1224_s0 + $0x40] sm:$0xff]  ;;  %v28_v6 = vld [vmem:[%s1224_s0 + $0x48] sm:$0xff]  ;;  %904 = vset.pattern.permute.xlu1 %v908_v3  ;;  %905 = vset.pattern.permute.xlu0 %v908_v3  ;;  %v29_v16 = vld [vmem:[%s1224_s0 + $0x50] sm:$0xff] }
   0x3   :  { %v855_v4 = vcombine.high %v19_v0, %v27_v1  ;;  %v854_v5 = vcombine.low %v19_v0, %v27_v1  ;;  %v35_v7 = vld [vmem:[%s1224_s0 + $0x80] sm:$0xff]  ;;  %v857_v9 = vcombine.high %v20_v2, %v28_v6  ;;  %v856_v10 = vcombine.low %v20_v2, %v28_v6  ;;  %v36_v12 = vld [vmem:[%s1224_s0 + $0x88] sm:$0xff]  ;;  %v22_v17 = vld [vmem:[%s1224_s0 + $0x18] sm:$0xff] }
   0x4   :  { %v43_v8 = vld [vmem:[%s1224_s0 + $0xc0] sm:$0xff]  ;;  %v44_v13 = vld [vmem:[%s1224_s0 + $0xc8] sm:$0xff]  ;;  %v30_v19 = vld [vmem:[%s1224_s0 + $0x58] sm:$0xff]  ;;  %v859_v21 = vcombine.high %v21_v15, %v29_v16  ;;  %v858_v28 = vcombine.low %v21_v15, %v29_v16 }
   0x5   :  { %v871_v11 = vcombine.high %v35_v7, %v43_v8  ;;  %215 = vmatprep.subr.bf16.mxu0 %v855_v4  ;;  %v873_v14 = vcombine.high %v36_v12, %v44_v13  ;;  %256 = vmatprep.subr.bf16.mxu1 %v857_v9  ;;  %v870_v18 = vcombine.low %v35_v7, %v43_v8  ;;  %v37_v23 = vld [vmem:[%s1224_s0 + $0x90] sm:$0xff]  ;;  %v38_v25 = vld [vmem:[%s1224_s0 + $0x98] sm:$0xff]  ;;  %v990_v27 = vld [vmem:[%s1225_s1] sm:$0x3] }
   0x6   :  { %216 = vmatpush1.bf16.msra.mxu0 %v854_v5  ;;  %257 = vmatpush1.bf16.msra.mxu1 %v856_v10  ;;  %v872_v20 = vcombine.low %v36_v12, %v44_v13  ;;  %v861_v22 = vcombine.high %v22_v17, %v30_v19  ;;  %v45_v24 = vld [vmem:[%s1224_s0 + $0xd0] sm:$0xff]  ;;  %v46_v26 = vld [vmem:[%s1224_s0 + $0xd8] sm:$0xff]  ;;  %v860_v29 = vcombine.low %v22_v17, %v30_v19  ;;  %v23_v32 = vld [vmem:[%s1224_s0 + $0x20] sm:$0xff] }
   0x7   :  { %217 = vmatprep.subr.bf16.mxu0 %v871_v11  ;;  %258 = vmatprep.subr.bf16.mxu1 %v873_v14  ;;  %v875_v30 = vcombine.high %v37_v23, %v45_v24  ;;  %v877_v31 = vcombine.high %v38_v25, %v46_v26  ;;  %v31_v33 = vld [vmem:[%s1224_s0 + $0x60] sm:$0xff]  ;;  %v24_v34 = vld [vmem:[%s1224_s0 + $0x28] sm:$0xff]  ;;  %v874_v36 = vcombine.low %v37_v23, %v45_v24  ;;  %v25_v48 = vld [vmem:[%s1224_s0 + $0x30] sm:$0xff] }
   0x8   :  { %v32_v35 = vld [vmem:[%s1224_s0 + $0x68] sm:$0xff]  ;;  %v876_v37 = vcombine.low %v38_v25, %v46_v26  ;;  %v863_v38 = vcombine.high %v23_v32, %v31_v33  ;;  %v39_v40 = vld [vmem:[%s1224_s0 + $0xa0] sm:$0xff]  ;;  %v862_v44 = vcombine.low %v23_v32, %v31_v33  ;;  %v33_v49 = vld [vmem:[%s1224_s0 + $0x70] sm:$0xff] }
   0x9   :  { %v865_v39 = vcombine.high %v24_v34, %v32_v35  ;;  %v47_v41 = vld [vmem:[%s1224_s0 + $0xe0] sm:$0xff]  ;;  %v40_v42 = vld [vmem:[%s1224_s0 + $0xa8] sm:$0xff]  ;;  %v864_v45 = vcombine.low %v24_v34, %v32_v35  ;;  %v26_v50 = vld [vmem:[%s1224_s0 + $0x38] sm:$0xff]  ;;  %v867_v54 = vcombine.high %v25_v48, %v33_v49  ;;  %v866_v60 = vcombine.low %v25_v48, %v33_v49 }
   0xa   :  { %218 = vmatpush1.bf16.msra.mxu0 %v870_v18  ;;  %259 = vmatpush1.bf16.msra.mxu1 %v872_v20  ;;  %v48_v43 = vld [vmem:[%s1224_s0 + $0xe8] sm:$0xff]  ;;  %v879_v46 = vcombine.high %v39_v40, %v47_v41  ;;  %v34_v51 = vld [vmem:[%s1224_s0 + $0x78] sm:$0xff]  ;;  %v878_v52 = vcombine.low %v39_v40, %v47_v41  ;;  %v41_v56 = vld [vmem:[%s1224_s0 + $0xb0] sm:$0xff] }
   0xb   :  { %297 = vmatprep.subr.bf16.mxu0 %v859_v21  ;;  %338 = vmatprep.subr.bf16.mxu1 %v861_v22  ;;  %v881_v47 = vcombine.high %v40_v42, %v48_v43  ;;  %v880_v53 = vcombine.low %v40_v42, %v48_v43  ;;  %v869_v55 = vcombine.high %v26_v50, %v34_v51  ;;  %v49_v57 = vld [vmem:[%s1224_s0 + $0xf0] sm:$0xff]  ;;  %v42_v58 = vld [vmem:[%s1224_s0 + $0xb8] sm:$0xff] }
   0xc   :  { %v50_v59 = vld [vmem:[%s1224_s0 + $0xf8] sm:$0xff]  ;;  %v868_v61 = vcombine.low %v26_v50, %v34_v51  ;;  %v883_v62 = vcombine.high %v41_v56, %v49_v57  ;;  %v882_v0 = vcombine.low %v41_v56, %v49_v57 }
   0xd   :  { %886 = vmatmul.mubr.msk.bf16.vlgmr.msra.gmra.mrb[0].mxu0 %vm211_vm0, %v990_v27  ;;  %887 = vmatmul.mubr.msk.bf16.vlgmr.msra.gmra.mrb[0].mxu1 %vm211_vm0, %v990_v27  ;;  %v885_v63 = vcombine.high %v42_v58, %v50_v59  ;;  %v884_v1 = vcombine.low %v42_v58, %v50_v59 }
   0xe   :  { %298 = vmatpush1.bf16.msra.mxu0 %v858_v28  ;;  %339 = vmatpush1.bf16.msra.mxu1 %v860_v29 }
   0xf   :  { %299 = vmatprep.subr.bf16.mxu0 %v875_v30  ;;  %340 = vmatprep.subr.bf16.mxu1 %v877_v31 }
  0x10   :  { %329 = vmatprep.mubr.bf16.mxu0 %v908_v3  ;;  %370 = vmatprep.mubr.bf16.mxu1 %v908_v3 }
  0x12   :  { %300 = vmatpush1.bf16.msra.mxu0 %v874_v36  ;;  %341 = vmatpush1.bf16.msra.mxu1 %v876_v37 }
  0x13   :  { %379 = vmatprep.subr.bf16.mxu0 %v863_v38  ;;  %420 = vmatprep.subr.bf16.mxu1 %v865_v39 }
  0x15   :  { %888 = vmatmul.mubr.msk.bf16.vlgmr.msra.gmra.mrb[4].mxu0 %vm211_vm0, %v990_v27  ;;  %889 = vmatmul.mubr.msk.bf16.vlgmr.msra.gmra.mrb[4].mxu1 %vm211_vm0, %v990_v27 }
  0x16   :  { %380 = vmatpush1.bf16.msra.mxu0 %v862_v44  ;;  %421 = vmatpush1.bf16.msra.mxu1 %v864_v45 }
  0x17   :  { %381 = vmatprep.subr.bf16.mxu0 %v879_v46  ;;  %422 = vmatprep.subr.bf16.mxu1 %v881_v47 }
  0x18   :  { %411 = vmatprep.mubr.bf16.mxu0 %v908_v3  ;;  %452 = vmatprep.mubr.bf16.mxu1 %v908_v3 }
  0x1a   :  { %382 = vmatpush1.bf16.msra.mxu0 %v878_v52  ;;  %423 = vmatpush1.bf16.msra.mxu1 %v880_v53 }
  0x1b   :  { %461 = vmatprep.subr.bf16.mxu0 %v867_v54  ;;  %502 = vmatprep.subr.bf16.mxu1 %v869_v55 }
  0x1d   :  { %890 = vmatmul.mubr.msk.bf16.vlgmr.msra.gmra.mrb[8].mxu0 %vm211_vm0, %v990_v27  ;;  %891 = vmatmul.mubr.msk.bf16.vlgmr.msra.gmra.mrb[8].mxu1 %vm211_vm0, %v990_v27 }
  0x1e   :  { %462 = vmatpush1.bf16.msra.mxu0 %v866_v60  ;;  %503 = vmatpush1.bf16.msra.mxu1 %v868_v61 }
  0x1f   :  { %463 = vmatprep.subr.bf16.mxu0 %v883_v62  ;;  %504 = vmatprep.subr.bf16.mxu1 %v885_v63 }
  0x20   :  { %493 = vmatprep.mubr.bf16.mxu0 %v908_v3  ;;  %534 = vmatprep.mubr.bf16.mxu1 %v908_v3 }
  0x22   :  { %464 = vmatpush1.bf16.msra.mxu0 %v882_v0  ;;  %505 = vmatpush1.bf16.msra.mxu1 %v884_v1 }
  0x25   :  { %892 = vmatmul.mubr.msk.bf16.vlgmr.msra.gmra.mrb[12].mxu0 %vm211_vm0, %v990_v27  ;;  %893 = vmatmul.mubr.msk.bf16.vlgmr.msra.gmra.mrb[12].mxu1 %vm211_vm0, %v990_v27 }
  0xe0   :  { %v1062_v2 = vpop.f32.mrb[0].mxu0  ;;  %v1070_v3 = vpop.f32.mrb[0].mxu1 }
  0xe1   :  { %v544_v4 = vsel %vm543_vm1, %v1062_v2, 0.0  ;;  %v577_v5 = vmul.f32 %v1062_v2, %v1062_v2  ;;  %v1068_v6 = vpop.f32.mrb[1].mxu0  ;;  %v547_v10 = vsel %vm543_vm1, %v1070_v3, 0.0  ;;  %v579_v11 = vmul.f32 %v1070_v3, %v1070_v3  ;;  %v1080_v12 = vpop.f32.mrb[1].mxu1 }
  0xe2   :  { %v545_v7 = vsel %vm543_vm1, %v1068_v6, 0.0  ;;  %v578_v8 = vmul.f32 %v1068_v6, %v1068_v6  ;;  %v253_v9 = vpop.f32.mrb[2].mxu0  ;;  %v580_v16 = vmul.f32 %v1080_v12, %v1080_v12  ;;  %v294_v17 = vpop.f32.mrb[2].mxu1  ;;  %v549_v20 = vsel %vm543_vm1, %v1080_v12, 0.0 }
  0xe3   :  { %v593_v13 = vsel %vm543_vm1, %v577_v5, 0.0  ;;  %v546_v14 = vadd.f32 %v545_v7, %v544_v4  ;;  %v254_v15 = vpop.f32.mrb[3].mxu0  ;;  %v596_v19 = vsel %vm543_vm1, %v579_v11, 0.0  ;;  %v295_v21 = vpop.f32.mrb[3].mxu1 }
  0xe4   :  { %v594_v18 = vsel %vm543_vm1, %v578_v8, 0.0  ;;  %v598_v24 = vsel %vm543_vm1, %v580_v16, 0.0 }
  0xe5   :  { %v595_v22 = vadd.f32 %v594_v18, %v593_v13  ;;  %v548_v23 = vadd.f32 %v547_v10, %v546_v14 }
  0xe7   :  { %v597_v25 = vadd.f32 %v596_v19, %v595_v22  ;;  %v550_v26 = vadd.f32 %v549_v20, %v548_v23 }
  0xe8   :  { %v1090_v27 = vpop.f32.mrb[4].mxu0  ;;  %v1098_v32 = vpop.f32.mrb[4].mxu1 }
  0xe9   :  { %v599_v28 = vadd.f32 %v598_v24, %v597_v25  ;;  %v551_v29 = vsel %vm543_vm1, %v1090_v27, 0.0  ;;  %v581_v30 = vmul.f32 %v1090_v27, %v1090_v27  ;;  %v1096_v31 = vpop.f32.mrb[5].mxu0  ;;  %v1104_v37 = vpop.f32.mrb[5].mxu1  ;;  %v555_v39 = vsel %vm543_vm1, %v1098_v32, 0.0 }
  0xea   :  { %v552_v33 = vadd.f32 %v551_v29, %v550_v26  ;;  %v553_v34 = vsel %vm543_vm1, %v1096_v31, 0.0  ;;  %v582_v35 = vmul.f32 %v1096_v31, %v1096_v31  ;;  %v335_v36 = vpop.f32.mrb[6].mxu0  ;;  %v583_v40 = vmul.f32 %v1098_v32, %v1098_v32  ;;  %v376_v42 = vpop.f32.mrb[6].mxu1 }
  0xeb   :  { %v600_v38 = vsel %vm543_vm1, %v581_v30, 0.0  ;;  %v336_v41 = vpop.f32.mrb[7].mxu0  ;;  %v377_v46 = vpop.f32.mrb[7].mxu1  ;;  %v584_v48 = vmul.f32 %v1104_v37, %v1104_v37  ;;  %v557_v51 = vsel %vm543_vm1, %v1104_v37, 0.0 }
  0xec   :  { %v601_v43 = vadd.f32 %v600_v38, %v599_v28  ;;  %v554_v44 = vadd.f32 %v553_v34, %v552_v33  ;;  %v602_v45 = vsel %vm543_vm1, %v582_v35, 0.0  ;;  %v604_v47 = vsel %vm543_vm1, %v583_v40, 0.0 }
  0xed   :  { %v606_v55 = vsel %vm543_vm1, %v584_v48, 0.0 }
  0xee   :  { %v603_v49 = vadd.f32 %v602_v45, %v601_v43  ;;  %v556_v50 = vadd.f32 %v555_v39, %v554_v44 }
  0xf0   :  { %v605_v52 = vadd.f32 %v604_v47, %v603_v49  ;;  %v558_v53 = vadd.f32 %v557_v51, %v556_v50  ;;  %v1117_v54 = vpop.f32.mrb[8].mxu0  ;;  %v1126_v59 = vpop.f32.mrb[8].mxu1 }
  0xf1   :  { %v559_v56 = vsel %vm543_vm1, %v1117_v54, 0.0  ;;  %v585_v57 = vmul.f32 %v1117_v54, %v1117_v54  ;;  %v1124_v58 = vpop.f32.mrb[9].mxu0  ;;  %v1132_v1 = vpop.f32.mrb[9].mxu1  ;;  %v563_v5 = vsel %vm543_vm1, %v1126_v59, 0.0  ;;  %v587_v7 = vmul.f32 %v1126_v59, %v1126_v59 }
  0xf2   :  { %v607_v60 = vadd.f32 %v606_v55, %v605_v52  ;;  %v560_v61 = vadd.f32 %v559_v56, %v558_v53  ;;  %v561_v62 = vsel %vm543_vm1, %v1124_v58, 0.0  ;;  %v586_v63 = vmul.f32 %v1124_v58, %v1124_v58  ;;  %v417_v0 = vpop.f32.mrb[10].mxu0  ;;  %v458_v9 = vpop.f32.mrb[10].mxu1 }
  0xf3   :  { %v608_v4 = vsel %vm543_vm1, %v585_v57, 0.0  ;;  %v418_v8 = vpop.f32.mrb[11].mxu0  ;;  %v459_v14 = vpop.f32.mrb[11].mxu1  ;;  %v612_v15 = vsel %vm543_vm1, %v587_v7, 0.0  ;;  %v588_v16 = vmul.f32 %v1132_v1, %v1132_v1  ;;  %v565_v19 = vsel %vm543_vm1, %v1132_v1, 0.0 }
  0xf4   :  { %v609_v10 = vadd.f32 %v608_v4, %v607_v60  ;;  %v562_v11 = vadd.f32 %v561_v62, %v560_v61  ;;  %v610_v13 = vsel %vm543_vm1, %v586_v63, 0.0 }
  0xf5   :  { %v614_v23 = vsel %vm543_vm1, %v588_v16, 0.0 }
  0xf6   :  { %v611_v17 = vadd.f32 %v610_v13, %v609_v10  ;;  %v564_v18 = vadd.f32 %v563_v5, %v562_v11 }
  0xf8   :  { %v613_v20 = vadd.f32 %v612_v15, %v611_v17  ;;  %v566_v21 = vadd.f32 %v565_v19, %v564_v18  ;;  %v1145_v22 = vpop.f32.mrb[12].mxu0  ;;  %v1154_v28 = vpop.f32.mrb[12].mxu1  ;;  %v779_v18 = vlaneseq }
  0xf9   :  { %v567_v24 = vsel %vm543_vm1, %v1145_v22, 0.0  ;;  %v589_v25 = vmul.f32 %v1145_v22, %v1145_v22  ;;  %v1152_v26 = vpop.f32.mrb[13].mxu0  ;;  %v1160_v36 = vpop.f32.mrb[13].mxu1  ;;  %v591_v39 = vmul.f32 %v1154_v28, %v1154_v28  ;;  %v571_v42 = vsel %vm543_vm1, %v1154_v28, 0.0 }
  0xfa   :  { %v615_v29 = vadd.f32 %v614_v23, %v613_v20  ;;  %v568_v30 = vadd.f32 %v567_v24, %v566_v21  ;;  %v569_v33 = vsel %vm543_vm1, %v1152_v26, 0.0  ;;  %v590_v34 = vmul.f32 %v1152_v26, %v1152_v26  ;;  %v499_v35 = vpop.f32.mrb[14].mxu0  ;;  %v540_v41 = vpop.f32.mrb[14].mxu1 }
  0xfb   :  { %v616_v38 = vsel %vm543_vm1, %v589_v25, 0.0  ;;  %v500_v40 = vpop.f32.mrb[15].mxu0  ;;  %v541_v45 = vpop.f32.mrb[15].mxu1  ;;  %v592_v47 = vmul.f32 %v1160_v36, %v1160_v36  ;;  %v620_v48 = vsel %vm543_vm1, %v591_v39, 0.0  ;;  %v573_v51 = vsel %vm543_vm1, %v1160_v36, 0.0 }
  0xfc   :  { %v617_v43 = vadd.f32 %v616_v38, %v615_v29  ;;  %v618_v44 = vsel %vm543_vm1, %v590_v34, 0.0  ;;  %v570_v46 = vadd.f32 %v569_v33, %v568_v30  ;;  %v780_v21 = vshrl.u32 %v779_v18, 7 }
  0xfd   :  { %v622_v55 = vsel %vm543_vm1, %v592_v47, 0.0 }
  0xfe   :  { %v572_v49 = vadd.f32 %v571_v42, %v570_v46  ;;  %v619_v50 = vadd.f32 %v618_v44, %v617_v43 }
 0x100   :  { %v574_v52 = vadd.f32 %v573_v51, %v572_v49  ;;  %v621_v53 = vadd.f32 %v620_v48, %v619_v50 }
 0x102   :  { %575 = vadd.xlane.f32.xlu0 %v574_v52  ;;  %v623_v56 = vadd.f32 %v622_v55, %v621_v53 }
 0x106   :  { %624 = vadd.xlane.f32.xlu0 %v623_v56 }
 0x18f   :  { %v576_v57 = vpop.xlane.xlu0 %575 }
 0x190   :  { %v626_v60 = vmul.f32 0.00048828125, %v576_v57 }
 0x192   :  { %v628_v61 = vmul.f32 %v626_v60, %v626_v60  ;;  %v635_v62 = vsub.f32 %v1062_v2, %v626_v60  ;;  %v636_v63 = vsub.f32 %v1068_v6, %v626_v60  ;;  %v637_v0 = vsub.f32 %v1070_v3, %v626_v60 }
 0x193   :  { %v625_v4 = vpop.xlane.xlu0 %624  ;;  %v638_v5 = vsub.f32 %v1080_v12, %v626_v60  ;;  %v639_v7 = vsub.f32 %v1090_v27, %v626_v60  ;;  %v640_v8 = vsub.f32 %v1096_v31, %v626_v60  ;;  %v641_v9 = vsub.f32 %v1098_v32, %v626_v60 }
 0x194   :  { %v627_v10 = vmul.f32 0.00048828125, %v625_v4  ;;  %v642_v11 = vsub.f32 %v1104_v37, %v626_v60  ;;  %v643_v13 = vsub.f32 %v1117_v54, %v626_v60  ;;  %v644_v2 = vsub.f32 %v1124_v58, %v626_v60  ;;  %v633_v37 = vld [vmem:[%s1226_s2] sm:$0xf] }
 0x195   :  { %v645_v6 = vsub.f32 %v1126_v59, %v626_v60  ;;  %v646_v3 = vsub.f32 %v1132_v1, %v626_v60  ;;  %v647_v14 = vsub.f32 %v1145_v22, %v626_v60  ;;  %v648_v12 = vsub.f32 %v1152_v26, %v626_v60  ;;  %v672_v59 = vld [vmem:[%s1227_s3] sm:$0xf] }
 0x196   :  { %v629_v27 = vsub.f32 %v627_v10, %v628_v61  ;;  %v649_v31 = vsub.f32 %v1154_v28, %v626_v60  ;;  %v650_v32 = vsub.f32 %v1160_v36, %v626_v60  ;;  %v909_v1 = vmov 1983009808  }
 0x197   :  { %v777_v17 = vunpack.c.l.s4 %v909_v1 }
 0x198   :  { %v630_v15 = vmax.f32 %v629_v27, 0.0 }
 0x199   :  { %v778_v20 = vunpack.c.0.s8 %v777_v17 }
 0x19a   :  { %v631_v16 = vadd.f32 1e-05, %v630_v15 }
 0x19b   :  { %v781_v4 = vsub.s32 %v778_v20, %v780_v21 }
 0x19c   :  { %906 = vrsqrt.f32 %v631_v16 }
 0x1a6   :  { %v907_v54 = vpop.eup %906 }
 0x1a7   :  { %v634_v58 = vmul.f32 %v907_v54, %v633_v37 }
 0x1a9   :  { %653 = vperm.xlu1 %904, %v634_v58  }
 0x1ad   :  { %675 = vperm.xlu1 %904, %v672_v59  }
 0x228   :  { %v654_v19 = vpop.permute.xlu1 %653 }
 0x229   :  { %v656_v22 = vmul.f32 %v654_v19, %v635_v62  ;;  %v657_v23 = vmul.f32 %v654_v19, %v636_v63  ;;  %v658_v24 = vmul.f32 %v654_v19, %v637_v0  ;;  %v659_v25 = vmul.f32 %v654_v19, %v638_v5 }
 0x22a   :  { %v660_v26 = vmul.f32 %v654_v19, %v639_v7  ;;  %v661_v28 = vmul.f32 %v654_v19, %v640_v8  ;;  %v662_v29 = vmul.f32 %v654_v19, %v641_v9  ;;  %v663_v30 = vmul.f32 %v654_v19, %v642_v11 }
 0x22b   :  { %v664_v33 = vmul.f32 %v654_v19, %v643_v13  ;;  %v665_v34 = vmul.f32 %v654_v19, %v644_v2  ;;  %v666_v35 = vmul.f32 %v654_v19, %v645_v6  ;;  %v667_v36 = vmul.f32 %v654_v19, %v646_v3 }
 0x22c   :  { %v668_v38 = vmul.f32 %v654_v19, %v647_v14  ;;  %v669_v39 = vmul.f32 %v654_v19, %v648_v12  ;;  %v670_v40 = vmul.f32 %v654_v19, %v649_v31  ;;  %v671_v41 = vmul.f32 %v654_v19, %v650_v32  ;;  %v676_v42 = vpop.permute.xlu1 %675 }
 0x22d   :  { %v678_v43 = vadd.f32 %v676_v42, %v656_v22  ;;  %v679_v44 = vadd.f32 %v676_v42, %v657_v23  ;;  %v680_v45 = vadd.f32 %v676_v42, %v658_v24  ;;  %v681_v46 = vadd.f32 %v676_v42, %v659_v25 }
 0x22e   :  { %v682_v47 = vadd.f32 %v676_v42, %v660_v26  ;;  %v683_v48 = vadd.f32 %v676_v42, %v661_v28  ;;  %v684_v49 = vadd.f32 %v676_v42, %v662_v29  ;;  %v685_v50 = vadd.f32 %v676_v42, %v663_v30 }
 0x22f   :  { %v686_v51 = vadd.f32 %v676_v42, %v664_v33  ;;  %v687_v52 = vadd.f32 %v676_v42, %v665_v34  ;;  %v688_v53 = vadd.f32 %v676_v42, %v666_v35  ;;  %v689_v55 = vadd.f32 %v676_v42, %v667_v36 }
 0x230   :  { %v690_v56 = vadd.f32 %v676_v42, %v668_v38  ;;  %v691_v57 = vadd.f32 %v676_v42, %v669_v39  ;;  %v692_v60 = vadd.f32 %v676_v42, %v670_v40  ;;  %v693_v61 = vadd.f32 %v676_v42, %v671_v41 }
 0x231   :  { %vm694_vm2 = vcmp.ge.f32.partialorder %v678_v43, 0.0  ;;  %vm695_vm3 = vcmp.ge.f32.partialorder %v679_v44, 0.0  ;;  %vm696_vm4 = vcmp.ge.f32.partialorder %v680_v45, 0.0  ;;  %vm697_vm5 = vcmp.ge.f32.partialorder %v681_v46, 0.0 }
 0x232   :  { %vm698_vm6 = vcmp.ge.f32.partialorder %v682_v47, 0.0  ;;  %vm699_vm7 = vcmp.ge.f32.partialorder %v683_v48, 0.0  ;;  %vm700_vm8 = vcmp.ge.f32.partialorder %v684_v49, 0.0  ;;  %vm701_vm9 = vcmp.ge.f32.partialorder %v685_v50, 0.0 }
 0x233   :  { %vm702_vm10 = vcmp.ge.f32.partialorder %v686_v51, 0.0  ;;  %vm703_vm11 = vcmp.ge.f32.partialorder %v687_v52, 0.0  ;;  %vm704_vm12 = vcmp.ge.f32.partialorder %v688_v53, 0.0  ;;  %vm705_vm13 = vcmp.ge.f32.partialorder %v689_v55, 0.0 }
 0x234   :  { %vm706_vm14 = vcmp.ge.f32.partialorder %v690_v56, 0.0  ;;  %vm707_vm15 = vcmp.ge.f32.partialorder %v691_v57, 0.0  ;;  %vm708_vm0 = vcmp.ge.f32.partialorder %v692_v60, 0.0  ;;  %vm709_vm1 = vcmp.ge.f32.partialorder %v693_v61, 0.0 }
 0x235   :  { %v710_v62 = vmul.f32 0.2, %v678_v43  ;;  %v711_v63 = vmul.f32 0.2, %v679_v44  ;;  %v712_v0 = vmul.f32 0.2, %v680_v45 }
 0x236   :  { %v713_v5 = vmul.f32 0.2, %v681_v46  ;;  %v714_v7 = vmul.f32 0.2, %v682_v47  ;;  %v715_v8 = vmul.f32 0.2, %v683_v48 }
 0x237   :  { %v716_v9 = vmul.f32 0.2, %v684_v49  ;;  %v717_v10 = vmul.f32 0.2, %v685_v50  ;;  %v718_v11 = vmul.f32 0.2, %v686_v51  ;;  %v726_v13 = vsel %vm694_vm2, %v678_v43, %v710_v62 }
 0x238   :  { %v719_v2 = vmul.f32 0.2, %v687_v52  ;;  %v720_v6 = vmul.f32 0.2, %v688_v53  ;;  %v721_v3 = vmul.f32 0.2, %v689_v55  ;;  %v727_v14 = vsel %vm695_vm3, %v679_v44, %v711_v63 }
 0x239   :  { %v722_v12 = vmul.f32 0.2, %v690_v56  ;;  %v723_v27 = vmul.f32 0.2, %v691_v57  ;;  %v724_v31 = vmul.f32 0.2, %v692_v60  ;;  %v728_v32 = vsel %vm696_vm4, %v680_v45, %v712_v0 }
 0x23a   :  { %v725_v15 = vmul.f32 0.2, %v693_v61  ;;  %v729_v16 = vsel %vm697_vm5, %v681_v46, %v713_v5  ;;  %v730_v37 = vsel %vm698_vm6, %v682_v47, %v714_v7  ;;  %v731_v54 = vsel %vm699_vm7, %v683_v48, %v715_v8 }
 0x23b   :  { %v732_v58 = vsel %vm700_vm8, %v684_v49, %v716_v9  ;;  %v733_v59 = vsel %vm701_vm9, %v685_v50, %v717_v10  ;;  %v734_v1 = vsel %vm702_vm10, %v686_v51, %v718_v11  ;;  %v735_v17 = vsel %vm703_vm11, %v687_v52, %v719_v2 }
 0x23c   :  { %v736_v18 = vsel %vm704_vm12, %v688_v53, %v720_v6  ;;  %v737_v19 = vsel %vm705_vm13, %v689_v55, %v721_v3  ;;  %v738_v20 = vsel %vm706_vm14, %v690_v56, %v722_v12  ;;  %v739_v21 = vsel %vm707_vm15, %v691_v57, %v723_v27 }
 0x23d   :  { %v740_v22 = vsel %vm708_vm0, %v692_v60, %v724_v31  ;;  %v741_v23 = vsel %vm709_vm1, %v693_v61, %v725_v15  ;;  %v894_v24 = vpack.c.bf16 %v727_v14, %v726_v13  ;;  %v895_v25 = vpack.c.bf16 %v729_v16, %v728_v32 }
 0x23e   :  { %v896_v26 = vpack.c.bf16 %v731_v54, %v730_v37  ;;  %v897_v28 = vpack.c.bf16 %v733_v59, %v732_v58  ;;  %v898_v29 = vpack.c.bf16 %v735_v17, %v734_v1  ;;  %v899_v30 = vpack.c.bf16 %v737_v19, %v736_v18 }
 0x23f   :  { %v782_v33 = vrot.slane %v894_v24, %v781_v4  ;;  %v789_v34 = vrot.slane %v895_v25, %v781_v4  ;;  %v900_v35 = vpack.c.bf16 %v739_v21, %v738_v20  ;;  %v901_v36 = vpack.c.bf16 %v741_v23, %v740_v22 }
 0x240   :  { %v799_v38 = vrot.slane %v896_v26, %v781_v4  ;;  %v806_v39 = vrot.slane %v897_v28, %v781_v4  ;;  %v816_v40 = vrot.slane %v898_v29, %v781_v4  ;;  %v823_v41 = vrot.slane %v899_v30, %v781_v4 }
 0x241   :  { %v790_v42 = vcombine.low %v782_v33, %v789_v34  ;;  %v833_v43 = vrot.slane %v900_v35, %v781_v4  ;;  %v840_v44 = vrot.slane %v901_v36, %v781_v4 }
 0x242   :  { %v807_v45 = vcombine.low %v799_v38, %v806_v39  ;;  %v824_v46 = vcombine.low %v816_v40, %v823_v41 }
 0x243   :  { %v841_v47 = vcombine.low %v833_v43, %v840_v44  ;;  %846 = vst [vmem:[%s1228_s4] sm:$0xff] %v790_v42 }
 0x244   :  { %847 = vst [vmem:[%s1228_s4 + $0x8] sm:$0xff] %v807_v45  ;;  %848 = vst [vmem:[%s1228_s4 + $0x10] sm:$0xff] %v824_v46 }
 0x245   :  { %849 = vst [vmem:[%s1228_s4 + $0x18] sm:$0xff] %v841_v47 }

// kernel: netI_forward.6
= control target key start
LH: loop header
LB: loop body
LE: loop exit
PB: predicated region body
PF: predicated region fallthrough
CT: control target
= control target key end

     0   :  { %v332_v1 = vmov 0   ;;  %vm115_vm0 = vcmask 523264   ;;  %s421_s0 = inlined_call_operand.vmem [shape: bf16[64,512], index: 0, kind: input, shape index: {}]   ;;  %s422_s1 = inlined_call_operand.vmem [shape: bf16[8,64], index: 1, kind: input, shape index: {}]   ;;  %s423_s2 = inlined_call_operand.vmem [shape: f32[8,1], index: 2, kind: input, shape index: {}]   ;;  %s424_s3 = inlined_call_operand.vmem [shape: f32[8,1], index: 3, kind: input, shape index: {}]   ;;  %s425_s4 = inlined_call_operand.vmem [shape: bf16[8,512], index: 4, kind: output, shape index: {}]  }
   0x1   :  { %v306_v0 = vld [vmem:[%s421_s0 + $0x4] ss:$16 sps:$4 sm:$0xff]   ;;  %151 = vmatprep.mubr.bf16.mxu0 %v332_v1  ;;  %192 = vmatprep.mubr.bf16.mxu1 %v332_v1  ;;  %v308_v2 = vld [vmem:[%s421_s0 + $0xc] ss:$16 sps:$4 sm:$0xff]   ;;  %v310_v3 = vld [vmem:[%s421_s0] ss:$16 sps:$4 sm:$0xff]  }
   0x2   :  { %304 = vset.pattern.permute.xlu1 %v332_v1  ;;  %305 = vset.pattern.permute.xlu0 %v332_v1  ;;  %v311_v4 = vld [vmem:[%s421_s0 + $0x8] ss:$16 sps:$4 sm:$0xff]   ;;  %v312_v5 = vld [vmem:[%s421_s0 + $0x24] ss:$16 sps:$4 sm:$0xff]   ;;  %v314_v6 = vld [vmem:[%s421_s0 + $0x2c] ss:$16 sps:$4 sm:$0xff]  }
   0x3   :  { %119 = vmatprep.subr.bf16.mxu0 %v306_v0  ;;  %160 = vmatprep.subr.bf16.mxu1 %v308_v2  ;;  %v316_v7 = vld [vmem:[%s421_s0 + $0x20] ss:$16 sps:$4 sm:$0xff]   ;;  %v317_v8 = vld [vmem:[%s421_s0 + $0x28] ss:$16 sps:$4 sm:$0xff]   ;;  %v318_v9 = vld [vmem:[%s421_s0 + $0x44] ss:$16 sps:$4 sm:$0xff]  }
   0x4   :  { %120 = vmatpush1.bf16.msra.mxu0 %v310_v3  ;;  %161 = vmatpush1.bf16.msra.mxu1 %v311_v4  ;;  %v320_v10 = vld [vmem:[%s421_s0 + $0x4c] ss:$16 sps:$4 sm:$0xff]   ;;  %v322_v11 = vld [vmem:[%s421_s0 + $0x40] ss:$16 sps:$4 sm:$0xff]   ;;  %v323_v12 = vld [vmem:[%s421_s0 + $0x48] ss:$16 sps:$4 sm:$0xff]  }
   0x5   :  { %121 = vmatprep.subr.bf16.mxu0 %v312_v5  ;;  %162 = vmatprep.subr.bf16.mxu1 %v314_v6  ;;  %v324_v13 = vld [vmem:[%s421_s0 + $0x64] ss:$16 sps:$4 sm:$0xff]   ;;  %v326_v14 = vld [vmem:[%s421_s0 + $0x6c] ss:$16 sps:$4 sm:$0xff]   ;;  %v328_v15 = vld [vmem:[%s421_s0 + $0x60] ss:$16 sps:$4 sm:$0xff]  }
   0x6   :  { %v329_v16 = vld [vmem:[%s421_s0 + $0x68] ss:$16 sps:$4 sm:$0xff]   ;;  %v18_v17 = vld [vmem:[%s422_s1] sm:$0xf] }
   0x7   :  { %v222_v48 = vld [vmem:[%s423_s2] sm:$0xff] }
   0x8   :  { %122 = vmatpush1.bf16.msra.mxu0 %v316_v7  ;;  %163 = vmatpush1.bf16.msra.mxu1 %v317_v8  ;;  %v237_v51 = vld [vmem:[%s424_s3] sm:$0xff] }
   0x9   :  { %123 = vmatprep.subr.bf16.mxu0 %v318_v9  ;;  %164 = vmatprep.subr.bf16.mxu1 %v320_v10 }
   0xc   :  { %124 = vmatpush1.bf16.msra.mxu0 %v322_v11  ;;  %165 = vmatpush1.bf16.msra.mxu1 %v323_v12 }
   0xd   :  { %125 = vmatprep.subr.bf16.mxu0 %v324_v13  ;;  %166 = vmatprep.subr.bf16.mxu1 %v326_v14 }
  0x10   :  { %126 = vmatpush1.bf16.msra.mxu0 %v328_v15  ;;  %167 = vmatpush1.bf16.msra.mxu1 %v329_v16 }
  0x13   :  { %297 = vmatmul.mubr.msk.bf16.vlgmr.msra.gmra.mrb[0].mxu0 %vm115_vm0, %v18_v17  ;;  %298 = vmatmul.mubr.msk.bf16.vlgmr.msra.gmra.mrb[0].mxu1 %vm115_vm0, %v18_v17 }
  0xe6   :  { %v153_v18 = vpop.f32.mrb[0].mxu0  ;;  %v194_v19 = vpop.f32.mrb[0].mxu1 }
  0xe7   :  { %v206_v20 = vmul.f32 %v153_v18, %v153_v18  ;;  %v155_v21 = vpop.f32.mrb[1].mxu0  ;;  %v196_v22 = vpop.f32.mrb[1].mxu1  ;;  %v208_v23 = vmul.f32 %v194_v19, %v194_v19 }
  0xe8   :  { %v201_v24 = vadd.f32 %v155_v21, %v153_v18  ;;  %v207_v25 = vmul.f32 %v155_v21, %v155_v21  ;;  %v157_v26 = vpop.f32.mrb[2].mxu0  ;;  %v198_v27 = vpop.f32.mrb[2].mxu1  ;;  %v209_v33 = vmul.f32 %v196_v22, %v196_v22 }
  0xe9   :  { %v158_v28 = vpop.f32.mrb[3].mxu0  ;;  %v199_v29 = vpop.f32.mrb[3].mxu1 }
  0xea   :  { %v202_v30 = vadd.f32 %v201_v24, %v194_v19  ;;  %v210_v31 = vadd.f32 %v207_v25, %v206_v20 }
  0xec   :  { %v203_v32 = vadd.f32 %v202_v30, %v196_v22  ;;  %v211_v34 = vadd.f32 %v210_v31, %v208_v23 }
  0xee   :  { %204 = vadd.xlane.f32.xlu0 %v203_v32  ;;  %v212_v35 = vadd.f32 %v211_v34, %v209_v33 }
  0xf2   :  { %213 = vadd.xlane.f32.xlu0 %v212_v35 }
 0x17b   :  { %v205_v36 = vpop.xlane.xlu0 %204 }
 0x17c   :  { %v215_v37 = vmul.f32 0.001953125, %v205_v36 }
 0x17e   :  { %v224_v38 = vsub.f32 %v153_v18, %v215_v37  ;;  %v225_v39 = vsub.f32 %v155_v21, %v215_v37  ;;  %v226_v40 = vsub.f32 %v194_v19, %v215_v37  ;;  %v227_v42 = vsub.f32 %v196_v22, %v215_v37 }
 0x17f   :  { %v214_v41 = vpop.xlane.xlu0 %213  ;;  %v217_v43 = vmul.f32 %v215_v37, %v215_v37 }
 0x180   :  { %v216_v44 = vmul.f32 0.001953125, %v214_v41 }
 0x182   :  { %v218_v45 = vsub.f32 %v216_v44, %v217_v43 }
 0x184   :  { %v219_v46 = vmax.f32 %v218_v45, 0.0 }
 0x186   :  { %v220_v47 = vadd.f32 1e-05, %v219_v46 }
 0x188   :  { %330 = vrsqrt.f32 %v220_v47 }
 0x192   :  { %v331_v49 = vpop.eup %330 }
 0x193   :  { %v223_v50 = vmul.f32 %v331_v49, %v222_v48 }
 0x195   :  { %230 = vperm.xlu1 %304, %v223_v50  }
 0x199   :  { %240 = vperm.xlu1 %304, %v237_v51  }
 0x214   :  { %v231_v52 = vpop.permute.xlu1 %230 }
 0x215   :  { %v233_v53 = vmul.f32 %v231_v52, %v224_v38  ;;  %v234_v54 = vmul.f32 %v231_v52, %v225_v39  ;;  %v235_v55 = vmul.f32 %v231_v52, %v226_v40  ;;  %v236_v56 = vmul.f32 %v231_v52, %v227_v42 }
 0x218   :  { %v241_v57 = vpop.permute.xlu1 %240 }
 0x219   :  { %v243_v58 = vadd.f32 %v241_v57, %v233_v53  ;;  %v244_v59 = vadd.f32 %v241_v57, %v234_v54  ;;  %v245_v60 = vadd.f32 %v241_v57, %v235_v55  ;;  %v246_v61 = vadd.f32 %v241_v57, %v236_v56 }
 0x21b   :  { %vm247_vm1 = vcmp.ge.f32.partialorder %v243_v58, 0.0  ;;  %vm248_vm2 = vcmp.ge.f32.partialorder %v244_v59, 0.0  ;;  %vm249_vm3 = vcmp.ge.f32.partialorder %v245_v60, 0.0  ;;  %vm250_vm4 = vcmp.ge.f32.partialorder %v246_v61, 0.0 }
 0x21c   :  { %v251_v62 = vmul.f32 0.2, %v243_v58  ;;  %v252_v63 = vmul.f32 0.2, %v244_v59  ;;  %v253_v0 = vmul.f32 0.2, %v245_v60 }
 0x21d   :  { %v254_v1 = vmul.f32 0.2, %v246_v61 }
 0x21e   :  { %v255_v2 = vsel %vm247_vm1, %v243_v58, %v251_v62  ;;  %v256_v3 = vsel %vm248_vm2, %v244_v59, %v252_v63  ;;  %v257_v4 = vsel %vm249_vm3, %v245_v60, %v253_v0 }
 0x21f   :  { %v258_v5 = vsel %vm250_vm4, %v246_v61, %v254_v1  ;;  %v301_v6 = vpack.c.bf16 %v256_v3, %v255_v2 }
 0x220   :  { %v302_v7 = vpack.c.bf16 %v258_v5, %v257_v4 }
 0x221   :  { %275 = vst [vmem:[%s425_s4] sm:$0xff] %v301_v6 }
 0x222   :  { %276 = vst [vmem:[%s425_s4 + $0x8] sm:$0xff] %v302_v7 }

// kernel: netI_forward.7
= control target key start
LH: loop header
LB: loop body
LE: loop exit
PB: predicated region body
PF: predicated region fallthrough
CT: control target
= control target key end

     0   :  { %v272_v0 = vmov 0.0   ;;  %vm273_vm0 = vmmov 0   ;;  %v274_v16 = vmov 0   ;;  %s342_s0 = inlined_call_operand.vmem [shape: bf16[128,128], index: 0, kind: input, shape index: {}]   ;;  %s343_s1 = inlined_call_operand.vmem [shape: bf16[16,128], index: 1, kind: input, shape index: {}]   ;;  %s344_s3 = inlined_call_operand.vmem [shape: f32[16,1], index: 3, kind: input, shape index: {}]   ;;  %s345_s2 = inlined_call_operand.vmem [shape: f32[16,1], index: 2, kind: input, shape index: {}]   ;;  %s346_s4 = inlined_call_operand.vmem [shape: bf16[16,128], index: 4, kind: output, shape index: {}]  }
   0x1   :  { %234 = vmatprep.subr.bf16.mxu0 %v272_v0  ;;  %v259_v1 = vld [vmem:[%s342_s0] sm:$0xff]   ;;  %250 = vmatprep.mubr.msk.bf16.mxu0 %vm273_vm0, %v272_v0  ;;  %v260_v2 = vld [vmem:[%s342_s0 + $0x8] sm:$0xff]   ;;  %v261_v3 = vld [vmem:[%s342_s0 + $0x10] sm:$0xff]  }
   0x2   :  { %235 = vmatpush3.bf16.msra.mxu0 %v259_v1  ;;  %v262_v4 = vld [vmem:[%s342_s0 + $0x18] sm:$0xff]   ;;  %v263_v5 = vld [vmem:[%s342_s0 + $0x20] sm:$0xff]   ;;  %v264_v6 = vld [vmem:[%s342_s0 + $0x28] sm:$0xff]   ;;  %258 = vset.pattern.permute.xlu1 %v274_v16 }
   0x3   :  { %236 = vmatprep.subr.bf16.mxu0 %v272_v0  ;;  %v265_v7 = vld [vmem:[%s342_s0 + $0x30] sm:$0xff]   ;;  %v266_v8 = vld [vmem:[%s342_s0 + $0x38] sm:$0xff]   ;;  %v267_v9 = vld [vmem:[%s343_s1] sm:$0xff]   ;;  %257 = vset.pattern.permute.xlu0 %v274_v16 }
   0x4   :  { %v173_v17 = vld [vmem:[%s344_s3] sm:$0xff]  ;;  %v156_v39 = vld [vmem:[%s345_s2 + $0x8] sm:$0xff] }
   0x5   :  { %v155_v36 = vld [vmem:[%s345_s2] sm:$0xff]  ;;  %v174_v42 = vld [vmem:[%s344_s3 + $0x8] sm:$0xff] }
   0x6   :  { %237 = vmatpush3.bf16.msra.mxu0 %v260_v2 }
   0x7   :  { %238 = vmatprep.subr.bf16.mxu0 %v272_v0 }
   0xa   :  { %239 = vmatpush3.bf16.msra.mxu0 %v261_v3 }
   0xb   :  { %240 = vmatprep.subr.bf16.mxu0 %v272_v0 }
   0xe   :  { %241 = vmatpush3.bf16.msra.mxu0 %v262_v4 }
   0xf   :  { %242 = vmatprep.subr.bf16.mxu0 %v272_v0 }
  0x12   :  { %243 = vmatpush3.bf16.msra.mxu0 %v263_v5 }
  0x13   :  { %244 = vmatprep.subr.bf16.mxu0 %v272_v0 }
  0x16   :  { %245 = vmatpush3.bf16.msra.mxu0 %v264_v6 }
  0x17   :  { %246 = vmatprep.subr.bf16.mxu0 %v272_v0 }
  0x1a   :  { %247 = vmatpush3.bf16.msra.mxu0 %v265_v7 }
  0x1b   :  { %248 = vmatprep.subr.bf16.mxu0 %v272_v0 }
  0x1e   :  { %249 = vmatpush3.bf16.msra.mxu0 %v266_v8 }
  0x21   :  { %251 = vmatmul.mubr.bf16.vlgmr.msra.gmra.mrb[0].mxu0 %v267_v9 }
  0xf4   :  { %v124_v10 = vpop.f32.mrb[0].mxu0 }
  0xf5   :  { %131 = vadd.xlane.f32.xlu0 %v124_v10  ;;  %v252_v11 = vpop.f32.mrb[1].mxu0  ;;  %v135_v12 = vmul.f32 %v124_v10, %v124_v10 }
  0xf6   :  { %v127_v13 = vpop.f32.mrb[2].mxu0 }
  0xf7   :  { %137 = vadd.xlane.f32.xlu1 %v135_v12  ;;  %v253_v14 = vpop.f32.mrb[3].mxu0  ;;  %v136_v15 = vmul.f32 %v127_v13, %v127_v13 }
  0xf9   :  { %133 = vadd.xlane.f32.xlu0 %v127_v13 }
  0xfb   :  { %139 = vadd.xlane.f32.xlu1 %v136_v15 }
 0x10c   :  { %177 = vperm.xlu1 %258, %v173_v17  }
 0x182   :  { %v132_v18 = vpop.xlane.xlu0 %131 }
 0x183   :  { %v141_v19 = vmul.f32 0.0078125, %v132_v18 }
 0x184   :  { %v138_v20 = vpop.xlane.xlu1 %137 }
 0x185   :  { %v145_v21 = vmul.f32 %v141_v19, %v141_v19  ;;  %v143_v22 = vmul.f32 0.0078125, %v138_v20  ;;  %v159_v23 = vsub.f32 %v124_v10, %v141_v19 }
 0x186   :  { %v134_v24 = vpop.xlane.xlu0 %133 }
 0x187   :  { %v147_v25 = vsub.f32 %v143_v22, %v145_v21  ;;  %v142_v26 = vmul.f32 0.0078125, %v134_v24 }
 0x188   :  { %v140_v27 = vpop.xlane.xlu1 %139 }
 0x189   :  { %v149_v28 = vmax.f32 %v147_v25, 0.0  ;;  %v146_v29 = vmul.f32 %v142_v26, %v142_v26  ;;  %v144_v30 = vmul.f32 0.0078125, %v140_v27  ;;  %v160_v31 = vsub.f32 %v127_v13, %v142_v26 }
 0x18b   :  { %v151_v32 = vadd.f32 1e-05, %v149_v28  ;;  %v148_v33 = vsub.f32 %v144_v30, %v146_v29 }
 0x18c   :  { %v178_v43 = vpop.permute.xlu1 %177 }
 0x18d   :  { %268 = vrsqrt.f32 %v151_v32  ;;  %v150_v34 = vmax.f32 %v148_v33, 0.0 }
 0x18f   :  { %v152_v35 = vadd.f32 1e-05, %v150_v34 }
 0x191   :  { %270 = vrsqrt.f32 %v152_v35 }
 0x197   :  { %v269_v37 = vpop.eup %268 }
 0x198   :  { %v157_v38 = vmul.f32 %v269_v37, %v155_v36 }
 0x19a   :  { %163 = vperm.xlu0 %257, %v157_v38  }
 0x19b   :  { %v271_v40 = vpop.eup %270 }
 0x19c   :  { %v158_v41 = vmul.f32 %v271_v40, %v156_v39 }
 0x19e   :  { %168 = vperm.xlu1 %258, %v158_v41  }
 0x1a2   :  { %182 = vperm.xlu1 %258, %v174_v42  }
 0x219   :  { %v164_v44 = vpop.permute.xlu0 %163 }
 0x21a   :  { %v171_v45 = vmul.f32 %v164_v44, %v159_v23 }
 0x21c   :  { %v185_v47 = vadd.f32 %v178_v43, %v171_v45 }
 0x21d   :  { %v169_v46 = vpop.permute.xlu1 %168 }
 0x21e   :  { %v172_v48 = vmul.f32 %v169_v46, %v160_v31  ;;  %v189_v50 = vmul.f32 0.2, %v185_v47  ;;  %vm187_vm1 = vcmp.ge.f32.partialorder %v185_v47, 0.0 }
 0x220   :  { %v191_v53 = vsel %vm187_vm1, %v185_v47, %v189_v50 }
 0x221   :  { %v183_v49 = vpop.permute.xlu1 %182 }
 0x222   :  { %v186_v51 = vadd.f32 %v183_v49, %v172_v48 }
 0x224   :  { %vm188_vm2 = vcmp.ge.f32.partialorder %v186_v51, 0.0  ;;  %v190_v52 = vmul.f32 0.2, %v186_v51 }
 0x226   :  { %v192_v54 = vsel %vm188_vm2, %v186_v51, %v190_v52 }
 0x227   :  { %v223_v55 = vpack.c.bf16 %v192_v54, %v191_v53 }
 0x229   :  { %224 = vst [vmem:[%s346_s4] sm:$0xff] %v223_v55  }

// kernel: netI_forward.8
= control target key start
LH: loop header
LB: loop body
LE: loop exit
PB: predicated region body
PF: predicated region fallthrough
CT: control target
= control target key end

     0   :  { %vm219_vm0 = vcmask 261120   ;;  %v482_v44 = vmov 0   ;;  %vm368_vm2 = vcmask 257024   ;;  %s650_s0 = inlined_call_operand.vmem [shape: bf16[256,32], index: 0, kind: input, shape index: {}]   ;;  %s651_s1 = inlined_call_operand.vmem [shape: bf16[32,256], index: 1, kind: input, shape index: {}]   ;;  %s652_s3 = inlined_call_operand.vmem [shape: f32[32,1], index: 3, kind: input, shape index: {}]   ;;  %s653_s2 = inlined_call_operand.vmem [shape: f32[32,1], index: 2, kind: input, shape index: {}]   ;;  %s654_s4 = inlined_call_operand.vmem [shape: bf16[32,32], index: 4, kind: output, shape index: {}]  }
   0x1   :  { %v452_v0 = vld [vmem:[%s650_s0 + $0x40] sm:$0xff]   ;;  %v454_v2 = vld [vmem:[%s650_s0 + $0x48] sm:$0xff]   ;;  %v456_v4 = vld [vmem:[%s650_s0 + $0x50] sm:$0xff]   ;;  %451 = vset.pattern.permute.xlu1 %v482_v44  ;;  %450 = vset.pattern.permute.xlu0 %v482_v44 }
   0x2   :  { %v453_v1 = vld [vmem:[%s650_s0] sm:$0xff]   ;;  %405 = vmatprep.subr.bf16.mxu0 %v452_v0  ;;  %433 = vmatprep.subr.bf16.mxu1 %v452_v0  ;;  %v455_v3 = vld [vmem:[%s650_s0 + $0x8] sm:$0xff]   ;;  %v457_v5 = vld [vmem:[%s650_s0 + $0x10] sm:$0xff]  }
   0x3   :  { %406 = vmatpush3.bf16.msra.mxu0 %v453_v1  ;;  %441 = vmatpush3.bf16.msra.mxu1 %v453_v1  ;;  %v458_v6 = vld [vmem:[%s650_s0 + $0x58] sm:$0xff]   ;;  %v460_v8 = vld [vmem:[%s650_s0 + $0x60] sm:$0xff]   ;;  %v462_v10 = vld [vmem:[%s650_s0 + $0x68] sm:$0xff]  }
   0x4   :  { %407 = vmatprep.subr.bf16.mxu0 %v454_v2  ;;  %434 = vmatprep.subr.bf16.mxu1 %v454_v2  ;;  %v459_v7 = vld [vmem:[%s650_s0 + $0x18] sm:$0xff]   ;;  %v461_v9 = vld [vmem:[%s650_s0 + $0x20] sm:$0xff]   ;;  %v463_v13 = vld [vmem:[%s650_s0 + $0x28] sm:$0xff]  }
   0x5   :  { %v470_v11 = vld [vmem:[%s651_s1 + $0x4] ss:$8 sps:$4 sm:$0xff]   ;;  %v473_v12 = vld [vmem:[%s651_s1 + $0x14] ss:$8 sps:$4 sm:$0xff]   ;;  %v468_v18 = vld [vmem:[%s651_s1] ss:$8 sps:$4 sm:$0xff]  }
   0x6   :  { %v464_v14 = vld [vmem:[%s650_s0 + $0x70] sm:$0xff]   ;;  %202 = vmatprep.mubr.bf16.mxu0 %v470_v11  ;;  %210 = vmatprep.mubr.bf16.mxu1 %v473_v12  ;;  %v466_v16 = vld [vmem:[%s650_s0 + $0x78] sm:$0xff]   ;;  %v312_v45 = vld [vmem:[%s652_s3] sm:$0xff] }
   0x7   :  { %408 = vmatpush3.bf16.msra.mxu0 %v455_v3  ;;  %442 = vmatpush3.bf16.msra.mxu1 %v455_v3  ;;  %v465_v15 = vld [vmem:[%s650_s0 + $0x30] sm:$0xff]   ;;  %v467_v17 = vld [vmem:[%s650_s0 + $0x38] sm:$0xff]   ;;  %v313_v46 = vld [vmem:[%s652_s3 + $0x8] sm:$0xff] }
   0x8   :  { %409 = vmatprep.subr.bf16.mxu0 %v456_v4  ;;  %435 = vmatprep.subr.bf16.mxu1 %v456_v4  ;;  %v471_v19 = vld [vmem:[%s651_s1 + $0x10] ss:$8 sps:$4 sm:$0xff]  }
   0x9   :  { %v314_v47 = vld [vmem:[%s652_s3 + $0x10] sm:$0xff] }
   0xb   :  { %410 = vmatpush3.bf16.msra.mxu0 %v457_v5  ;;  %443 = vmatpush3.bf16.msra.mxu1 %v457_v5 }
   0xc   :  { %411 = vmatprep.subr.bf16.mxu0 %v458_v6  ;;  %436 = vmatprep.subr.bf16.mxu1 %v458_v6 }
   0xf   :  { %412 = vmatpush3.bf16.msra.mxu0 %v459_v7  ;;  %444 = vmatpush3.bf16.msra.mxu1 %v459_v7 }
  0x10   :  { %413 = vmatprep.subr.bf16.mxu0 %v460_v8  ;;  %437 = vmatprep.subr.bf16.mxu1 %v460_v8 }
  0x13   :  { %414 = vmatpush3.bf16.msra.mxu0 %v461_v9  ;;  %445 = vmatpush3.bf16.msra.mxu1 %v461_v9 }
  0x14   :  { %415 = vmatprep.subr.bf16.mxu0 %v462_v10  ;;  %438 = vmatprep.subr.bf16.mxu1 %v462_v10 }
  0x17   :  { %416 = vmatpush3.bf16.msra.mxu0 %v463_v13  ;;  %446 = vmatpush3.bf16.msra.mxu1 %v463_v13 }
  0x18   :  { %417 = vmatprep.subr.bf16.mxu0 %v464_v14  ;;  %439 = vmatprep.subr.bf16.mxu1 %v464_v14 }
  0x1b   :  { %418 = vmatpush3.bf16.msra.mxu0 %v465_v15  ;;  %447 = vmatpush3.bf16.msra.mxu1 %v465_v15 }
  0x1c   :  { %419 = vmatprep.subr.bf16.mxu0 %v466_v16  ;;  %440 = vmatprep.subr.bf16.mxu1 %v466_v16  ;;  %v276_v16 = vld [vmem:[%s653_s2] sm:$0xff] }
  0x1f   :  { %420 = vmatpush3.bf16.msra.mxu0 %v467_v17  ;;  %448 = vmatpush3.bf16.msra.mxu1 %v467_v17 }
  0x22   :  { %203 = vmatmul.mubr.bf16.vlgmr.msra.gmra.mrb[0].mxu0 %v468_v18  ;;  %211 = vmatmul.mubr.bf16.vlgmr.msra.gmra.mrb[0].mxu1 %v471_v19  ;;  %v278_v19 = vld [vmem:[%s653_s2 + $0x10] sm:$0xff] }
  0xf5   :  { %v421_v20 = vpop.f32.mrb[0].mxu0  ;;  %v427_v21 = vpop.f32.mrb[0].mxu1 }
  0xf6   :  { %v422_v22 = vpop.f32.mrb[1].mxu0  ;;  %v428_v23 = vpop.f32.mrb[1].mxu1 }
  0xf7   :  { %v568_v24 = vadd.f32 %v422_v22, %v421_v20  ;;  %v570_v25 = vadd.f32 %v428_v23, %v427_v21  ;;  %v424_v26 = vpop.f32.mrb[2].mxu0  ;;  %v430_v27 = vpop.f32.mrb[2].mxu1  ;;  %v277_v23 = vld [vmem:[%s653_s2 + $0x8] sm:$0xff] }
  0xf8   :  { %v425_v28 = vpop.f32.mrb[3].mxu0  ;;  %v431_v29 = vpop.f32.mrb[3].mxu1 }
  0xf9   :  { %v572_v30 = vadd.f32 %v425_v28, %v424_v26  ;;  %v574_v31 = vadd.f32 %v431_v29, %v430_v27  ;;  %v226_v32 = vsel %vm219_vm0, %v570_v25, 0.0  ;;  %v220_v33 = vsel %vm219_vm0, %v568_v24, 0.0  ;;  %v279_v28 = vld [vmem:[%s653_s2 + $0x18] sm:$0xff] }
  0xfa   :  { %227 = vadd.xlane.f32.xlu1 %v226_v32  ;;  %221 = vadd.xlane.f32.xlu0 %v220_v33  ;;  %v232_v37 = vmul.f32 %v568_v24, %v568_v24  ;;  %v234_v41 = vmul.f32 %v570_v25, %v570_v25  ;;  %v315_v32 = vld [vmem:[%s652_s3 + $0x18] sm:$0xff] }
  0xfb   :  { %v229_v34 = vsel %vm219_vm0, %v574_v31, 0.0  ;;  %v223_v35 = vsel %vm219_vm0, %v572_v30, 0.0  ;;  %v233_v36 = vmul.f32 %v572_v30, %v572_v30  ;;  %v235_v40 = vmul.f32 %v574_v31, %v574_v31 }
  0xfc   :  { %v236_v39 = vsel %vm219_vm0, %v232_v37, 0.0  ;;  %v242_v43 = vsel %vm219_vm0, %v234_v41, 0.0 }
  0xfd   :  { %v239_v38 = vsel %vm219_vm0, %v233_v36, 0.0  ;;  %v245_v42 = vsel %vm219_vm0, %v235_v40, 0.0 }
  0xfe   :  { %230 = vadd.xlane.f32.xlu1 %v229_v34  ;;  %224 = vadd.xlane.f32.xlu0 %v223_v35 }
 0x102   :  { %240 = vadd.xlane.f32.xlu1 %v239_v38  ;;  %237 = vadd.xlane.f32.xlu0 %v236_v39 }
 0x106   :  { %246 = vadd.xlane.f32.xlu1 %v245_v42  ;;  %243 = vadd.xlane.f32.xlu0 %v242_v43 }
 0x117   :  { %318 = vperm.xlu1 %451, %v312_v45  }
 0x11b   :  { %323 = vperm.xlu1 %451, %v313_v46  }
 0x11f   :  { %328 = vperm.xlu1 %451, %v314_v47  }
 0x187   :  { %v228_v48 = vpop.xlane.xlu1 %227  ;;  %v222_v49 = vpop.xlane.xlu0 %221 }
 0x188   :  { %v248_v52 = vmul.f32 0.03125, %v222_v49  ;;  %v250_v60 = vmul.f32 0.03125, %v228_v48 }
 0x18a   :  { %v256_v56 = vmul.f32 %v248_v52, %v248_v52  ;;  %v258_v2 = vmul.f32 %v250_v60, %v250_v60  ;;  %v284_v35 = vsub.f32 %v568_v24, %v248_v52  ;;  %v286_v40 = vsub.f32 %v570_v25, %v250_v60 }
 0x18b   :  { %v231_v50 = vpop.xlane.xlu1 %230  ;;  %v225_v51 = vpop.xlane.xlu0 %224 }
 0x18c   :  { %v605_v53 = vmul.f32 0.03125, %v225_v51  ;;  %v609_v62 = vmul.f32 0.03125, %v231_v50 }
 0x18e   :  { %v257_v59 = vmul.f32 %v605_v53, %v605_v53  ;;  %v259_v6 = vmul.f32 %v609_v62, %v609_v62  ;;  %v285_v46 = vsub.f32 %v572_v30, %v605_v53 }
 0x18f   :  { %v241_v54 = vpop.xlane.xlu1 %240  ;;  %v238_v55 = vpop.xlane.xlu0 %237 }
 0x190   :  { %v253_v57 = vmul.f32 0.03125, %v241_v54  ;;  %v252_v58 = vmul.f32 0.03125, %v238_v55  ;;  %v287_v55 = vsub.f32 %v574_v31, %v609_v62 }
 0x192   :  { %v260_v61 = vsub.f32 %v252_v58, %v256_v56  ;;  %v261_v63 = vsub.f32 %v253_v57, %v257_v59 }
 0x193   :  { %v247_v0 = vpop.xlane.xlu1 %246  ;;  %v244_v1 = vpop.xlane.xlu0 %243 }
 0x194   :  { %v264_v3 = vmax.f32 %v260_v61, 0.0  ;;  %v255_v4 = vmul.f32 0.03125, %v247_v0  ;;  %v254_v5 = vmul.f32 0.03125, %v244_v1  ;;  %v265_v9 = vmax.f32 %v261_v63, 0.0 }
 0x196   :  { %v268_v7 = vadd.f32 1e-05, %v264_v3  ;;  %v262_v8 = vsub.f32 %v254_v5, %v258_v2  ;;  %v263_v10 = vsub.f32 %v255_v4, %v259_v6  ;;  %v269_v13 = vadd.f32 1e-05, %v265_v9 }
 0x197   :  { %v319_v33 = vpop.permute.xlu1 %318 }
 0x198   :  { %v266_v11 = vmax.f32 %v262_v8, 0.0  ;;  %474 = vrsqrt.f32 %v268_v7  ;;  %v267_v14 = vmax.f32 %v263_v10, 0.0 }
 0x19a   :  { %v270_v12 = vadd.f32 1e-05, %v266_v11  ;;  %v271_v15 = vadd.f32 1e-05, %v267_v14 }
 0x19b   :  { %v324_v34 = vpop.permute.xlu1 %323 }
 0x19c   :  { %476 = vrsqrt.f32 %v270_v12 }
 0x19d   :  { %478 = vrsqrt.f32 %v269_v13 }
 0x19e   :  { %480 = vrsqrt.f32 %v271_v15 }
 0x19f   :  { %v329_v36 = vpop.permute.xlu1 %328 }
 0x1a2   :  { %v475_v17 = vpop.eup %474 }
 0x1a3   :  { %v280_v18 = vmul.f32 %v475_v17, %v276_v16 }
 0x1a5   :  { %290 = vperm.xlu0 %450, %v280_v18  }
 0x1a6   :  { %v477_v20 = vpop.eup %476 }
 0x1a7   :  { %v282_v21 = vmul.f32 %v477_v20, %v278_v19  ;;  %v479_v22 = vpop.eup %478 }
 0x1a8   :  { %v281_v26 = vmul.f32 %v479_v22, %v277_v23  ;;  %v481_v27 = vpop.eup %480 }
 0x1a9   :  { %300 = vperm.xlu1 %451, %v282_v21   ;;  %v283_v29 = vmul.f32 %v481_v27, %v279_v28 }
 0x1ad   :  { %295 = vperm.xlu1 %451, %v281_v26  }
 0x1b1   :  { %305 = vperm.xlu1 %451, %v283_v29  }
 0x1b5   :  { %333 = vperm.xlu1 %451, %v315_v32  }
 0x224   :  { %v291_v37 = vpop.permute.xlu0 %290 }
 0x225   :  { %v308_v38 = vmul.f32 %v291_v37, %v284_v35 }
 0x227   :  { %v336_v39 = vadd.f32 %v319_v33, %v308_v38 }
 0x228   :  { %v301_v41 = vpop.permute.xlu1 %300 }
 0x229   :  { %vm340_vm1 = vcmp.ge.f32.partialorder %v336_v39, 0.0  ;;  %v344_v42 = vmul.f32 0.2, %v336_v39  ;;  %v310_v43 = vmul.f32 %v301_v41, %v286_v40 }
 0x22b   :  { %v348_v44 = vsel %vm340_vm1, %v336_v39, %v344_v42  ;;  %v338_v45 = vadd.f32 %v329_v36, %v310_v43 }
 0x22c   :  { %v401_v47 = vpack.c.bf16 %v348_v44, %v348_v44  ;;  %v296_v48 = vpop.permute.xlu1 %295 }
 0x22d   :  { %vm342_vm3 = vcmp.ge.f32.partialorder %v338_v45, 0.0  ;;  %v346_v24 = vmul.f32 0.2, %v338_v45  ;;  %v309_v49 = vmul.f32 %v296_v48, %v285_v46 }
 0x22e   :  { %369 = vst.msk [vmem:[%s654_s4] sm:$0xf] %vm368_vm2, %v401_v47 }
 0x22f   :  { %v350_v25 = vsel %vm342_vm3, %v338_v45, %v346_v24  ;;  %v337_v50 = vadd.f32 %v324_v34, %v309_v49 }
 0x230   :  { %v403_v51 = vpack.c.bf16 %v350_v25, %v350_v25  ;;  %v306_v52 = vpop.permute.xlu1 %305 }
 0x231   :  { %vm341_vm4 = vcmp.ge.f32.partialorder %v337_v50, 0.0  ;;  %v345_v54 = vmul.f32 0.2, %v337_v50  ;;  %v311_v53 = vmul.f32 %v306_v52, %v287_v55 }
 0x232   :  { %371 = vst.msk [vmem:[%s654_s4 + $0x8] sm:$0xf] %vm368_vm2, %v403_v51 }
 0x233   :  { %v349_v30 = vsel %vm341_vm4, %v337_v50, %v345_v54 }
 0x234   :  { %v402_v56 = vpack.c.bf16 %v349_v30, %v349_v30  ;;  %v334_v57 = vpop.permute.xlu1 %333 }
 0x235   :  { %v339_v58 = vadd.f32 %v334_v57, %v311_v53 }
 0x236   :  { %370 = vst.msk [vmem:[%s654_s4 + $0x4] sm:$0xf] %vm368_vm2, %v402_v56 }
 0x237   :  { %vm343_vm5 = vcmp.ge.f32.partialorder %v339_v58, 0.0  ;;  %v347_v59 = vmul.f32 0.2, %v339_v58 }
 0x239   :  { %v351_v60 = vsel %vm343_vm5, %v339_v58, %v347_v59 }
 0x23a   :  { %v404_v61 = vpack.c.bf16 %v351_v60, %v351_v60 }
 0x23c   :  { %372 = vst.msk [vmem:[%s654_s4 + $0xc] sm:$0xf] %vm368_vm2, %v404_v61 }

// kernel: netI_forward.9
= control target key start
LH: loop header
LB: loop body
LE: loop exit
PB: predicated region body
PF: predicated region fallthrough
CT: control target
= control target key end

     0   :  { %v516_v1 = vmov 0   ;;  %vm389_vm0 = vcmask 15360   ;;  %s657_s0 = inlined_call_operand.vmem [shape: bf16[512,2], index: 0, kind: input, shape index: {}]   ;;  %s658_s1 = inlined_call_operand.vmem [shape: bf16[16,512], index: 1, kind: input, shape index: {}]   ;;  %s659_s2 = inlined_call_operand.vmem [shape: f32[16,1], index: 2, kind: input, shape index: {}]   ;;  %s660_s3 = inlined_call_operand.vmem [shape: f32[16,2], index: 3, kind: output, shape index: {}]  }
   0x1   :  { %v478_v0 = vld [vmem:[%s657_s0 + $0x40] sm:$0xff]   ;;  %477 = vset.pattern.permute.xlu0 %v516_v1  ;;  %v482_v5 = vld [vmem:[%s657_s0 + $0x48] sm:$0xff]   ;;  %v486_v9 = vld [vmem:[%s657_s0 + $0x50] sm:$0xff]  }
   0x2   :  { %v479_v2 = vld [vmem:[%s657_s0 + $0xc0] sm:$0xff]   ;;  %432 = vmatprep.subr.bf16.mxu0 %v478_v0  ;;  %v483_v6 = vld [vmem:[%s657_s0 + $0xc8] sm:$0xff]   ;;  %v487_v10 = vld [vmem:[%s657_s0 + $0xd0] sm:$0xff]  }
   0x3   :  { %v480_v3 = vld [vmem:[%s657_s0] sm:$0xff]   ;;  %454 = vmatprep.subr.bf16.mxu1 %v479_v2  ;;  %v484_v7 = vld [vmem:[%s657_s0 + $0x8] sm:$0xff]   ;;  %v488_v11 = vld [vmem:[%s657_s0 + $0x10] sm:$0xff]  }
   0x4   :  { %v481_v4 = vld [vmem:[%s657_s0 + $0x80] sm:$0xff]   ;;  %433 = vmatpush3.bf16.msra.mxu0 %v480_v3  ;;  %v485_v8 = vld [vmem:[%s657_s0 + $0x88] sm:$0xff]   ;;  %v489_v12 = vld [vmem:[%s657_s0 + $0x90] sm:$0xff]  }
   0x5   :  { %455 = vmatpush3.bf16.msra.mxu1 %v481_v4  ;;  %434 = vmatprep.subr.bf16.mxu0 %v482_v5  ;;  %v490_v13 = vld [vmem:[%s657_s0 + $0x58] sm:$0xff]   ;;  %v494_v17 = vld [vmem:[%s657_s0 + $0x60] sm:$0xff]   ;;  %v498_v21 = vld [vmem:[%s657_s0 + $0x68] sm:$0xff]  }
   0x6   :  { %456 = vmatprep.subr.bf16.mxu1 %v483_v6  ;;  %v491_v14 = vld [vmem:[%s657_s0 + $0xd8] sm:$0xff]   ;;  %v495_v18 = vld [vmem:[%s657_s0 + $0xe0] sm:$0xff]   ;;  %v499_v22 = vld [vmem:[%s657_s0 + $0xe8] sm:$0xff]  }
   0x7   :  { %v492_v15 = vld [vmem:[%s657_s0 + $0x18] sm:$0xff]   ;;  %v496_v19 = vld [vmem:[%s657_s0 + $0x20] sm:$0xff]   ;;  %v500_v23 = vld [vmem:[%s657_s0 + $0x28] sm:$0xff]  }
   0x8   :  { %435 = vmatpush3.bf16.msra.mxu0 %v484_v7  ;;  %v493_v16 = vld [vmem:[%s657_s0 + $0x98] sm:$0xff]   ;;  %v497_v20 = vld [vmem:[%s657_s0 + $0xa0] sm:$0xff]   ;;  %v501_v24 = vld [vmem:[%s657_s0 + $0xa8] sm:$0xff]  }
   0x9   :  { %457 = vmatpush3.bf16.msra.mxu1 %v485_v8  ;;  %436 = vmatprep.subr.bf16.mxu0 %v486_v9  ;;  %v502_v25 = vld [vmem:[%s657_s0 + $0x70] sm:$0xff]   ;;  %v506_v29 = vld [vmem:[%s657_s0 + $0x78] sm:$0xff]   ;;  %v83_v37 = vld [vmem:[%s659_s2] sm:$0xff] }
   0xa   :  { %458 = vmatprep.subr.bf16.mxu1 %v487_v10  ;;  %v503_v26 = vld [vmem:[%s657_s0 + $0xf0] sm:$0xff]   ;;  %v507_v30 = vld [vmem:[%s657_s0 + $0xf8] sm:$0xff]   ;;  %87 = vperm.xlu0 %477, %v83_v37   ;;  %v84_v38 = vld [vmem:[%s659_s2 + $0x8] sm:$0xff] }
   0xb   :  { %v504_v27 = vld [vmem:[%s657_s0 + $0x30] sm:$0xff]   ;;  %v508_v31 = vld [vmem:[%s657_s0 + $0x38] sm:$0xff]  }
   0xc   :  { %437 = vmatpush3.bf16.msra.mxu0 %v488_v11  ;;  %v505_v28 = vld [vmem:[%s657_s0 + $0xb0] sm:$0xff]   ;;  %v509_v32 = vld [vmem:[%s657_s0 + $0xb8] sm:$0xff]  }
   0xd   :  { %459 = vmatpush3.bf16.msra.mxu1 %v489_v12  ;;  %438 = vmatprep.subr.bf16.mxu0 %v490_v13  ;;  %v510_v33 = vld [vmem:[%s658_s1] ss:$16 sps:$4 sm:$0xff]   ;;  %v512_v34 = vld [vmem:[%s658_s1 + $0x4] ss:$16 sps:$4 sm:$0xff]   ;;  %v513_v35 = vld [vmem:[%s658_s1 + $0x8] ss:$16 sps:$4 sm:$0xff]  }
   0xe   :  { %460 = vmatprep.subr.bf16.mxu1 %v491_v14  ;;  %v515_v36 = vld [vmem:[%s658_s1 + $0xc] ss:$16 sps:$4 sm:$0xff]   ;;  %339 = vmatprep.mubr.bf16.mxu0 %v512_v34 }
   0xf   :  { %380 = vmatprep.mubr.bf16.mxu1 %v515_v36  ;;  %92 = vperm.xlu0 %477, %v84_v38  }
  0x10   :  { %439 = vmatpush3.bf16.msra.mxu0 %v492_v15 }
  0x11   :  { %461 = vmatpush3.bf16.msra.mxu1 %v493_v16  ;;  %440 = vmatprep.subr.bf16.mxu0 %v494_v17 }
  0x12   :  { %462 = vmatprep.subr.bf16.mxu1 %v495_v18 }
  0x14   :  { %441 = vmatpush3.bf16.msra.mxu0 %v496_v19 }
  0x15   :  { %463 = vmatpush3.bf16.msra.mxu1 %v497_v20  ;;  %442 = vmatprep.subr.bf16.mxu0 %v498_v21 }
  0x16   :  { %464 = vmatprep.subr.bf16.mxu1 %v499_v22 }
  0x18   :  { %443 = vmatpush3.bf16.msra.mxu0 %v500_v23 }
  0x19   :  { %465 = vmatpush3.bf16.msra.mxu1 %v501_v24  ;;  %444 = vmatprep.subr.bf16.mxu0 %v502_v25 }
  0x1a   :  { %466 = vmatprep.subr.bf16.mxu1 %v503_v26 }
  0x1c   :  { %445 = vmatpush3.bf16.msra.mxu0 %v504_v27 }
  0x1d   :  { %467 = vmatpush3.bf16.msra.mxu1 %v505_v28  ;;  %446 = vmatprep.subr.bf16.mxu0 %v506_v29 }
  0x1e   :  { %468 = vmatprep.subr.bf16.mxu1 %v507_v30 }
  0x20   :  { %447 = vmatpush3.bf16.msra.mxu0 %v508_v31 }
  0x21   :  { %469 = vmatpush3.bf16.msra.mxu1 %v509_v32 }
  0x23   :  { %340 = vmatmul.mubr.bf16.vlgmr.msra.gmra.mrb[0].mxu0 %v510_v33 }
  0x24   :  { %381 = vmatmul.mubr.bf16.vlgmr.msra.gmra.mrb[0].mxu1 %v513_v35 }
  0x89   :  { %v88_v39 = vpop.permute.xlu0 %87 }
  0x8e   :  { %v93_v52 = vpop.permute.xlu0 %92 }
  0xf6   :  { %v448_v40 = vpop.f32.mrb[0].mxu0 }
  0xf7   :  { %v470_v41 = vpop.f32.mrb[0].mxu1  ;;  %v449_v42 = vpop.f32.mrb[1].mxu0 }
  0xf8   :  { %v450_v43 = vadd.f32 %v449_v42, %v448_v40  ;;  %v471_v44 = vpop.f32.mrb[1].mxu1  ;;  %v451_v45 = vpop.f32.mrb[2].mxu0 }
  0xf9   :  { %v472_v46 = vadd.f32 %v471_v44, %v470_v41  ;;  %v473_v47 = vpop.f32.mrb[2].mxu1  ;;  %v452_v48 = vpop.f32.mrb[3].mxu0 }
  0xfa   :  { %v342_v49 = vadd.f32 %v450_v43, %v88_v39  ;;  %v453_v50 = vadd.f32 %v452_v48, %v451_v45  ;;  %v474_v51 = vpop.f32.mrb[3].mxu1 }
  0xfb   :  { %v475_v53 = vadd.f32 %v474_v51, %v473_v47 }
  0xfc   :  { %v383_v54 = vadd.f32 %v472_v46, %v342_v49  ;;  %v345_v55 = vadd.f32 %v453_v50, %v93_v52 }
  0xfe   :  { %390 = vst.msk [vmem:[%s660_s3] sm:$0xff] %vm389_vm0, %v383_v54  ;;  %v386_v56 = vadd.f32 %v475_v53, %v345_v55 }
 0x100   :  { %391 = vst.msk [vmem:[%s660_s3 + $0x8] sm:$0xff] %vm389_vm0, %v386_v56 }

</bundles_post_ra>
